<compile_context>
chip_gen: v7x
topology: tpu7x:2x2x1
jax: 0.10.0
libtpu: 0.0.40
codegen_flags: <defaults>
</compile_context>

<pallas_src>
import jax
import jax.numpy as jnp
from jax.experimental import pallas as pl
from jax.experimental.pallas import tpu as pltpu


def _conv1x1_kernel(w_ref, x_ref, o_ref):
    # w_ref: [Cout_blk, Cin] f32   x_ref: [Cin, HW] f32   o_ref: [Cout_blk, HW] f32
    # Cast to bf16 on-vreg (cheap VPU work, no HBM traffic) so the MXU runs its
    # fast bf16 path; accumulation stays f32.
    w = w_ref[...].astype(jnp.bfloat16)
    x = x_ref[...].astype(jnp.bfloat16)
    o_ref[...] = jnp.dot(w, x, preferred_element_type=jnp.float32).astype(o_ref.dtype)


def _auto_cout_blocks(cout):
    """2-way Cout split on v7x (2 TensorCores/chip); single block on v5e/v6e."""
    try:
        kind = jax.devices()[0].device_kind.lower()
    except Exception:
        return 1
    if "v7" in kind and cout % 2 == 0:
        return 2
    return 1


def conv2d_1x1(x_nchw, weight_oihw, *, num_cout_blocks=None):
    """1x1 stride-1 conv, no bias.  x: [N, Cin, H, W], weight: [Cout, Cin, 1, 1]."""
    N, Cin, H, W = x_nchw.shape
    Cout = weight_oihw.shape[0]
    HW = H * W

    nb = _auto_cout_blocks(Cout) if num_cout_blocks is None else num_cout_blocks
    assert Cout % nb == 0, f"Cout={Cout} must be divisible by num_cout_blocks={nb}"
    cb = Cout // nb

    # Free reshapes in native layout: no transposes, no per-call dtype converts.
    x3d = x_nchw.reshape(N, Cin, HW)
    w2d = weight_oihw.reshape(Cout, Cin)

    out_dtype = x_nchw.dtype
    in_bytes = (x3d.size * jnp.dtype(x3d.dtype).itemsize
                + w2d.size * jnp.dtype(w2d.dtype).itemsize)
    out_bytes = N * Cout * HW * jnp.dtype(out_dtype).itemsize
    cost = pl.CostEstimate(
        flops=2 * N * HW * Cin * Cout,
        transcendentals=0,
        bytes_accessed=in_bytes + out_bytes,
    )

    out3d = pl.pallas_call(
        _conv1x1_kernel,
        out_shape=jax.ShapeDtypeStruct((N, Cout, HW), out_dtype),
        grid_spec=pltpu.PrefetchScalarGridSpec(
            num_scalar_prefetch=0,
            # Cout-split axis (j) is the slow axis so the weight block stays
            # resident across the batch (n) loop; for N=1, nb=1 this is one step.
            grid=(nb, N),
            in_specs=[
                pl.BlockSpec((cb, Cin), lambda j, n: (j, 0)),
                pl.BlockSpec((None, Cin, HW), lambda j, n: (n, 0, 0)),
            ],
            out_specs=pl.BlockSpec((None, cb, HW), lambda j, n: (n, j, 0)),
        ),
        compiler_params=pltpu.CompilerParams(
            dimension_semantics=("parallel", "parallel"),
        ),
        cost_estimate=cost,
    )(w2d, x3d)

    # [N, Cout, H*W] -> [N, Cout, H, W]  (free reshape, native layout)
    return out3d.reshape(N, Cout, H, W)


if __name__ == "__main__":
    key = jax.random.PRNGKey(0)
    kx, kw = jax.random.split(key)

    # Shapes implied by the module: Conv2d(432, 432, 1x1), input [1, 432, 14, 14]
    N, C, H, W = 1, 432, 14, 14
    x = jax.random.normal(kx, (N, C, H, W), dtype=jnp.float32)
    # PyTorch weight shape: [Cout, Cin, 1, 1]
    weight = jax.random.normal(kw, (C, C, 1, 1), dtype=jnp.float32) * (1.0 / (C ** 0.5))

    conv = jax.jit(conv2d_1x1)
    y = conv(x, weight)
    jax.block_until_ready(y)

    # Reference in full f32; kernel casts to bf16 on-vreg with f32 accumulation.
    ref = jnp.einsum("nchw,oc->nohw", x, weight[:, :, 0, 0])
    assert y.shape == (N, C, H, W)
    assert y.dtype == x.dtype
    assert jnp.allclose(y, ref, atol=5e-2, rtol=5e-2)

    print("KERNEL_OK")
</pallas_src>

<mosaic_0001>
module attributes {stable_mosaic.version = 11 : i64} {
  func.func @_conv1x1_kernel(%arg0: i32, %arg1: i32, %arg2: memref<432x432xf32, #tpu.memory_space<vmem>>, %arg3: memref<1x432x196xf32, #tpu.memory_space<vmem>>, %arg4: memref<1x432x196xf32, #tpu.memory_space<vmem>>) attributes {dimension_semantics = [#tpu.dimension_semantics<parallel>, #tpu.dimension_semantics<parallel>], iteration_bounds = array<i64: 1, 1>, scalar_prefetch = 0 : i64, scratch_operands = 0 : i64, tpu.core_type = #tpu.core_type<tc>, window_params = [{transform_indices = @transform_0, window_bounds = array<i64: 432, 432>}, {transform_indices = @transform_1, window_bounds = array<i64: 1, 432, 196>}, {transform_indices = @transform_2, window_bounds = array<i64: 1, 432, 196>}]} {
    %c0 = arith.constant 0 : index
    %c0_0 = arith.constant 0 : index
    %0 = vector.load %arg2[%c0, %c0_0] : memref<432x432xf32, #tpu.memory_space<vmem>>, vector<432x432xf32>
    %1 = arith.truncf %0 : vector<432x432xf32> to vector<432x432xbf16>
    %c0_1 = arith.constant 0 : index
    %c0_2 = arith.constant 0 : index
    %c0_3 = arith.constant 0 : index
    %2 = vector.load %arg3[%c0_1, %c0_2, %c0_3] : memref<1x432x196xf32, #tpu.memory_space<vmem>>, vector<1x432x196xf32>
    %3 = vector.shape_cast %2 : vector<1x432x196xf32> to vector<432x196xf32>
    %4 = arith.truncf %3 : vector<432x196xf32> to vector<432x196xbf16>
    %cst = arith.constant dense<0.000000e+00> : vector<432x196xf32>
    %5 = tpu.matmul %1, %4, %cst {dimension_numbers = #tpu.dot_dimension_numbers<[1], [0], [0], [1], [0, 0, 1, 1], [], []>} : vector<432x432xbf16>, vector<432x196xbf16>, vector<432x196xf32> -> vector<432x196xf32>
    %c0_4 = arith.constant 0 : index
    %c0_5 = arith.constant 0 : index
    %c0_6 = arith.constant 0 : index
    %6 = vector.load %arg4[%c0_4, %c0_5, %c0_6] : memref<1x432x196xf32, #tpu.memory_space<vmem>>, vector<1x432x196xf32>
    %7 = vector.shape_cast %6 : vector<1x432x196xf32> to vector<432x196xf32>
    %8 = vector.shape_cast %5 : vector<432x196xf32> to vector<1x432x196xf32>
    tpu.vector_store %arg4[%c0_4, %c0_5, %c0_6], %8 {strides = array<i32>} : memref<1x432x196xf32, #tpu.memory_space<vmem>>, vector<1x432x196xf32>,
    return
  }
  func.func @transform_0(%arg0: i32, %arg1: i32) -> (i32, i32) {
    %c0_i32 = arith.constant 0 : i32
    %c0_i32_0 = arith.constant 0 : i32
    return %arg0, %c0_i32 : i32, i32
  }
  func.func @transform_1(%arg0: i32, %arg1: i32) -> (i32, i32, i32) {
    %c0_i32 = arith.constant 0 : i32
    %c0_i32_0 = arith.constant 0 : i32
    %c0_i32_1 = arith.constant 0 : i32
    return %arg1, %c0_i32, %c0_i32_0 : i32, i32, i32
  }
  func.func @transform_2(%arg0: i32, %arg1: i32) -> (i32, i32, i32) {
    %c0_i32 = arith.constant 0 : i32
    %c0_i32_0 = arith.constant 0 : i32
    return %arg1, %arg0, %c0_i32 : i32, i32, i32
  }
}

</mosaic_0001>

<bundles_post_ra>
// kernel: conv2d_1x1.1
= control target key start
LH: loop header
LB: loop body
LE: loop exit
PB: predicated region body
PF: predicated region fallthrough
CT: control target
= control target key end

     0   :  { %vm498_vm0 = vcmask 392192   ;;  %vm1187_vm1 = vcmask 556032   ;;  %s2826_s1 = inlined_call_operand.vmem [shape: f32[1,432,196], index: 1, kind: input, shape index: {}]   ;;  %s2827_s0 = inlined_call_operand.vmem [shape: f32[432,432], index: 0, kind: input, shape index: {}]   ;;  %s2828_s2 = inlined_call_operand.vmem [shape: f32[1,432,196], index: 2, kind: output, shape index: {}]  }
   0x1   :  { %v337_v0 = vld [vmem:[%s2826_s1 + $0x8] sm:$0xff]  ;;  %v339_v1 = vld [vmem:[%s2826_s1 + $0x18] sm:$0xff]  ;;  %v336_v2 = vld [vmem:[%s2826_s1] sm:$0xff] }
   0x2   :  { %v445_v3 = vpack.c.bf16 %v339_v1, %v337_v0  ;;  %v338_v4 = vld [vmem:[%s2826_s1 + $0x10] sm:$0xff]  ;;  %v341_v5 = vld [vmem:[%s2826_s1 + $0x28] sm:$0xff]  ;;  %v343_v6 = vld [vmem:[%s2826_s1 + $0x38] sm:$0xff] }
   0x3   :  { %v444_v7 = vpack.c.bf16 %v338_v4, %v336_v2  ;;  %v447_v8 = vpack.c.bf16 %v343_v6, %v341_v5  ;;  %v340_v9 = vld [vmem:[%s2826_s1 + $0x20] sm:$0xff]  ;;  %v342_v10 = vld [vmem:[%s2826_s1 + $0x30] sm:$0xff]  ;;  %v345_v11 = vld [vmem:[%s2826_s1 + $0x48] sm:$0xff] }
   0x4   :  { %580 = vmatprep.subr.bf16.mxu1 %v445_v3  ;;  %v347_v12 = vld [vmem:[%s2826_s1 + $0x58] sm:$0xff]  ;;  %v446_v13 = vpack.c.bf16 %v342_v10, %v340_v9  ;;  %v344_v15 = vld [vmem:[%s2826_s1 + $0x40] sm:$0xff]  ;;  %v346_v16 = vld [vmem:[%s2826_s1 + $0x50] sm:$0xff] }
   0x5   :  { %581 = vmatpush1.bf16.msra.mxu1 %v444_v7  ;;  %v449_v14 = vpack.c.bf16 %v347_v12, %v345_v11  ;;  %v349_v17 = vld [vmem:[%s2826_s1 + $0x68] sm:$0xff]  ;;  %v351_v18 = vld [vmem:[%s2826_s1 + $0x78] sm:$0xff]  ;;  %v400_v21 = vld [vmem:[%s2826_s1 + $0x200] sm:$0xff]  ;;  %v448_v23 = vpack.c.bf16 %v346_v16, %v344_v15 }
   0x6   :  { %582 = vmatprep.subr.bf16.mxu1 %v447_v8  ;;  %v401_v19 = vld [vmem:[%s2826_s1 + $0x208] sm:$0xff]  ;;  %v403_v20 = vld [vmem:[%s2826_s1 + $0x218] sm:$0xff]  ;;  %v402_v22 = vld [vmem:[%s2826_s1 + $0x210] sm:$0xff]  ;;  %v451_v28 = vpack.c.bf16 %v351_v18, %v349_v17 }
   0x7   :  { %v348_v24 = vld [vmem:[%s2826_s1 + $0x60] sm:$0xff]  ;;  %v350_v25 = vld [vmem:[%s2826_s1 + $0x70] sm:$0xff]  ;;  %v477_v26 = vpack.c.bf16 %v403_v20, %v401_v19  ;;  %v476_v27 = vpack.c.bf16 %v402_v22, %v400_v21  ;;  %v353_v29 = vld [vmem:[%s2826_s1 + $0x88] sm:$0xff] }
   0x8   :  { %v405_v30 = vld [vmem:[%s2826_s1 + $0x228] sm:$0xff]  ;;  %v407_v31 = vld [vmem:[%s2826_s1 + $0x238] sm:$0xff]  ;;  %v404_v34 = vld [vmem:[%s2826_s1 + $0x220] sm:$0xff]  ;;  %v450_v37 = vpack.c.bf16 %v350_v25, %v348_v24 }
   0x9   :  { %583 = vmatpush1.bf16.msra.mxu1 %v446_v13  ;;  %v355_v32 = vld [vmem:[%s2826_s1 + $0x98] sm:$0xff]  ;;  %883 = vmatprep.subr.bf16.mxu0 %v477_v26  ;;  %v479_v33 = vpack.c.bf16 %v407_v31, %v405_v30  ;;  %v406_v35 = vld [vmem:[%s2826_s1 + $0x230] sm:$0xff]  ;;  %v409_v38 = vld [vmem:[%s2826_s1 + $0x248] sm:$0xff] }
   0xa   :  { %584 = vmatprep.subr.bf16.mxu1 %v449_v14  ;;  %884 = vmatpush1.bf16.msra.mxu0 %v476_v27  ;;  %v478_v36 = vpack.c.bf16 %v406_v35, %v404_v34  ;;  %v411_v39 = vld [vmem:[%s2826_s1 + $0x258] sm:$0xff]  ;;  %v408_v40 = vld [vmem:[%s2826_s1 + $0x240] sm:$0xff]  ;;  %v453_v41 = vpack.c.bf16 %v355_v32, %v353_v29  ;;  %v354_v43 = vld [vmem:[%s2826_s1 + $0x90] sm:$0xff] }
   0xb   :  { %885 = vmatprep.subr.bf16.mxu0 %v479_v33  ;;  %v352_v42 = vld [vmem:[%s2826_s1 + $0x80] sm:$0xff]  ;;  %v481_v44 = vpack.c.bf16 %v411_v39, %v409_v38  ;;  %v410_v45 = vld [vmem:[%s2826_s1 + $0x250] sm:$0xff]  ;;  %v357_v46 = vld [vmem:[%s2826_s1 + $0xa8] sm:$0xff] }
   0xc   :  { %v359_v47 = vld [vmem:[%s2826_s1 + $0xb8] sm:$0xff]  ;;  %v413_v48 = vld [vmem:[%s2826_s1 + $0x268] sm:$0xff]  ;;  %v480_v49 = vpack.c.bf16 %v410_v45, %v408_v40  ;;  %v452_v51 = vpack.c.bf16 %v354_v43, %v352_v42  ;;  %v356_v52 = vld [vmem:[%s2826_s1 + $0xa0] sm:$0xff] }
   0xd   :  { %585 = vmatpush1.bf16.msra.mxu1 %v448_v23  ;;  %v415_v50 = vld [vmem:[%s2826_s1 + $0x278] sm:$0xff]  ;;  %v412_v54 = vld [vmem:[%s2826_s1 + $0x260] sm:$0xff]  ;;  %v414_v55 = vld [vmem:[%s2826_s1 + $0x270] sm:$0xff]  ;;  %v455_v56 = vpack.c.bf16 %v359_v47, %v357_v46 }
   0xe   :  { %586 = vmatprep.subr.bf16.mxu1 %v451_v28  ;;  %886 = vmatpush1.bf16.msra.mxu0 %v478_v36  ;;  %v483_v53 = vpack.c.bf16 %v415_v50, %v413_v48  ;;  %v358_v57 = vld [vmem:[%s2826_s1 + $0xb0] sm:$0xff]  ;;  %v417_v58 = vld [vmem:[%s2826_s1 + $0x288] sm:$0xff]  ;;  %v419_v59 = vld [vmem:[%s2826_s1 + $0x298] sm:$0xff]  ;;  %v482_v62 = vpack.c.bf16 %v414_v55, %v412_v54 }
   0xf   :  { %887 = vmatprep.subr.bf16.mxu0 %v481_v44  ;;  %v361_v60 = vld [vmem:[%s2826_s1 + $0xc8] sm:$0xff]  ;;  %v363_v61 = vld [vmem:[%s2826_s1 + $0xd8] sm:$0xff]  ;;  %v454_v63 = vpack.c.bf16 %v358_v57, %v356_v52  ;;  %v360_v0 = vld [vmem:[%s2826_s1 + $0xc0] sm:$0xff]  ;;  %v485_v1 = vpack.c.bf16 %v419_v59, %v417_v58 }
  0x10   :  { %v416_v2 = vld [vmem:[%s2826_s1 + $0x280] sm:$0xff]  ;;  %v418_v3 = vld [vmem:[%s2826_s1 + $0x290] sm:$0xff]  ;;  %v457_v4 = vpack.c.bf16 %v363_v61, %v361_v60  ;;  %v421_v6 = vld [vmem:[%s2826_s1 + $0x2a8] sm:$0xff] }
  0x11   :  { %587 = vmatpush1.bf16.msra.mxu1 %v450_v37  ;;  %v362_v5 = vld [vmem:[%s2826_s1 + $0xd0] sm:$0xff]  ;;  %v423_v7 = vld [vmem:[%s2826_s1 + $0x2b8] sm:$0xff]  ;;  %v365_v8 = vld [vmem:[%s2826_s1 + $0xe8] sm:$0xff]  ;;  %v484_v10 = vpack.c.bf16 %v418_v3, %v416_v2 }
  0x12   :  { %588 = vmatprep.subr.bf16.mxu1 %v453_v41  ;;  %888 = vmatpush1.bf16.msra.mxu0 %v480_v49  ;;  %v367_v9 = vld [vmem:[%s2826_s1 + $0xf8] sm:$0xff]  ;;  %v456_v11 = vpack.c.bf16 %v362_v5, %v360_v0  ;;  %v364_v12 = vld [vmem:[%s2826_s1 + $0xe0] sm:$0xff]  ;;  %v487_v13 = vpack.c.bf16 %v423_v7, %v421_v6  ;;  %v422_v15 = vld [vmem:[%s2826_s1 + $0x2b0] sm:$0xff] }
  0x13   :  { %889 = vmatprep.subr.bf16.mxu0 %v483_v53  ;;  %v420_v14 = vld [vmem:[%s2826_s1 + $0x2a0] sm:$0xff]  ;;  %v459_v16 = vpack.c.bf16 %v367_v9, %v365_v8  ;;  %v366_v17 = vld [vmem:[%s2826_s1 + $0xf0] sm:$0xff]  ;;  %v425_v18 = vld [vmem:[%s2826_s1 + $0x2c8] sm:$0xff] }
  0x14   :  { %v427_v19 = vld [vmem:[%s2826_s1 + $0x2d8] sm:$0xff]  ;;  %v369_v20 = vld [vmem:[%s2826_s1 + $0x108] sm:$0xff]  ;;  %v486_v22 = vpack.c.bf16 %v422_v15, %v420_v14  ;;  %v458_v23 = vpack.c.bf16 %v366_v17, %v364_v12  ;;  %v368_v24 = vld [vmem:[%s2826_s1 + $0x100] sm:$0xff] }
  0x15   :  { %589 = vmatpush1.bf16.msra.mxu1 %v452_v51  ;;  %v371_v21 = vld [vmem:[%s2826_s1 + $0x118] sm:$0xff]  ;;  %v489_v25 = vpack.c.bf16 %v427_v19, %v425_v18  ;;  %v424_v26 = vld [vmem:[%s2826_s1 + $0x2c0] sm:$0xff]  ;;  %v426_v27 = vld [vmem:[%s2826_s1 + $0x2d0] sm:$0xff] }
  0x16   :  { %590 = vmatprep.subr.bf16.mxu1 %v455_v56  ;;  %890 = vmatpush1.bf16.msra.mxu0 %v482_v62  ;;  %v461_v28 = vpack.c.bf16 %v371_v21, %v369_v20  ;;  %v370_v29 = vld [vmem:[%s2826_s1 + $0x110] sm:$0xff]  ;;  %v429_v30 = vld [vmem:[%s2826_s1 + $0x2e8] sm:$0xff]  ;;  %v431_v31 = vld [vmem:[%s2826_s1 + $0x2f8] sm:$0xff]  ;;  %v488_v34 = vpack.c.bf16 %v426_v27, %v424_v26 }
  0x17   :  { %891 = vmatprep.subr.bf16.mxu0 %v485_v1  ;;  %v373_v32 = vld [vmem:[%s2826_s1 + $0x128] sm:$0xff]  ;;  %v375_v33 = vld [vmem:[%s2826_s1 + $0x138] sm:$0xff]  ;;  %v460_v35 = vpack.c.bf16 %v370_v29, %v368_v24  ;;  %v372_v36 = vld [vmem:[%s2826_s1 + $0x120] sm:$0xff]  ;;  %v491_v37 = vpack.c.bf16 %v431_v31, %v429_v30 }
  0x18   :  { %v428_v38 = vld [vmem:[%s2826_s1 + $0x2e0] sm:$0xff]  ;;  %v430_v39 = vld [vmem:[%s2826_s1 + $0x2f0] sm:$0xff]  ;;  %v463_v40 = vpack.c.bf16 %v375_v33, %v373_v32  ;;  %v433_v42 = vld [vmem:[%s2826_s1 + $0x308] sm:$0xff] }
  0x19   :  { %591 = vmatpush1.bf16.msra.mxu1 %v454_v63  ;;  %v374_v41 = vld [vmem:[%s2826_s1 + $0x130] sm:$0xff]  ;;  %v435_v43 = vld [vmem:[%s2826_s1 + $0x318] sm:$0xff]  ;;  %v377_v44 = vld [vmem:[%s2826_s1 + $0x148] sm:$0xff]  ;;  %v490_v48 = vpack.c.bf16 %v430_v39, %v428_v38 }
  0x1a   :  { %592 = vmatprep.subr.bf16.mxu1 %v457_v4  ;;  %892 = vmatpush1.bf16.msra.mxu0 %v484_v10  ;;  %v379_v45 = vld [vmem:[%s2826_s1 + $0x158] sm:$0xff]  ;;  %v376_v46 = vld [vmem:[%s2826_s1 + $0x140] sm:$0xff]  ;;  %v378_v47 = vld [vmem:[%s2826_s1 + $0x150] sm:$0xff]  ;;  %v462_v51 = vpack.c.bf16 %v374_v41, %v372_v36  ;;  %v493_v52 = vpack.c.bf16 %v435_v43, %v433_v42 }
  0x1b   :  { %893 = vmatprep.subr.bf16.mxu0 %v487_v13  ;;  %v15_v49 = vld [vmem:[%s2827_s0 + $0x18] sm:$0xff]  ;;  %v432_v53 = vld [vmem:[%s2826_s1 + $0x300] sm:$0xff]  ;;  %v434_v54 = vld [vmem:[%s2826_s1 + $0x310] sm:$0xff]  ;;  %v465_v57 = vpack.c.bf16 %v379_v45, %v377_v44  ;;  %v464_v1 = vpack.c.bf16 %v378_v47, %v376_v46 }
  0x1c   :  { %v19_v50 = vld [vmem:[%s2827_s0 + $0x38] sm:$0xff]  ;;  %v437_v55 = vld [vmem:[%s2826_s1 + $0x328] sm:$0xff]  ;;  %v492_v0 = vpack.c.bf16 %v434_v54, %v432_v53  ;;  %v380_v2 = vld [vmem:[%s2826_s1 + $0x160] sm:$0xff] }
  0x1d   :  { %593 = vmatpush1.bf16.msra.mxu1 %v456_v11  ;;  %v231_v56 = vpack.c.bf16 %v19_v50, %v15_v49  ;;  %v439_v58 = vld [vmem:[%s2826_s1 + $0x338] sm:$0xff]  ;;  %v13_v59 = vld [vmem:[%s2827_s0 + $0x8] sm:$0xff]  ;;  %v436_v4 = vld [vmem:[%s2826_s1 + $0x320] sm:$0xff] }
  0x1e   :  { %594 = vmatprep.subr.bf16.mxu1 %v459_v16  ;;  %894 = vmatpush1.bf16.msra.mxu0 %v486_v22  ;;  %v17_v60 = vld [vmem:[%s2827_s0 + $0x28] sm:$0xff]  ;;  %v383_v62 = vld [vmem:[%s2826_s1 + $0x178] sm:$0xff]  ;;  %v495_v3 = vpack.c.bf16 %v439_v58, %v437_v55  ;;  %v438_v5 = vld [vmem:[%s2826_s1 + $0x330] sm:$0xff] }
  0x1f   :  { %895 = vmatprep.subr.bf16.mxu0 %v489_v25  ;;  %v381_v61 = vld [vmem:[%s2826_s1 + $0x168] sm:$0xff]  ;;  %1299 = vmatprep.mubr.msk.bf16.mxu0 %vm498_vm0, %v231_v56  ;;  %v229_v63 = vpack.c.bf16 %v17_v60, %v13_v59  ;;  %v382_v7 = vld [vmem:[%s2826_s1 + $0x170] sm:$0xff]  ;;  %v443_v9 = vld [vmem:[%s2826_s1 + $0x358] sm:$0xff]  ;;  %v494_v12 = vpack.c.bf16 %v438_v5, %v436_v4 }
  0x20   :  { %v467_v6 = vpack.c.bf16 %v383_v62, %v381_v61  ;;  %v441_v8 = vld [vmem:[%s2826_s1 + $0x348] sm:$0xff]  ;;  %v387_v11 = vld [vmem:[%s2826_s1 + $0x198] sm:$0xff]  ;;  %v466_v13 = vpack.c.bf16 %v382_v7, %v380_v2  ;;  %v440_v15 = vld [vmem:[%s2826_s1 + $0x340] sm:$0xff] }
  0x21   :  { %595 = vmatpush1.bf16.msra.mxu1 %v458_v23  ;;  %612 = vmatprep.mubr.bf16.mxu1 %v229_v63  ;;  %v385_v10 = vld [vmem:[%s2826_s1 + $0x188] sm:$0xff]  ;;  %v497_v14 = vpack.c.bf16 %v443_v9, %v441_v8  ;;  %v442_v16 = vld [vmem:[%s2826_s1 + $0x350] sm:$0xff]  ;;  %v384_v18 = vld [vmem:[%s2826_s1 + $0x180] sm:$0xff] }
  0x22   :  { %596 = vmatprep.subr.bf16.mxu1 %v461_v28  ;;  %896 = vmatpush1.bf16.msra.mxu0 %v488_v34  ;;  %v469_v17 = vpack.c.bf16 %v387_v11, %v385_v10  ;;  %v386_v19 = vld [vmem:[%s2826_s1 + $0x190] sm:$0xff]  ;;  %v389_v20 = vld [vmem:[%s2826_s1 + $0x1a8] sm:$0xff]  ;;  %v391_v21 = vld [vmem:[%s2826_s1 + $0x1b8] sm:$0xff]  ;;  %v496_v22 = vpack.c.bf16 %v442_v16, %v440_v15 }
  0x23   :  { %897 = vmatprep.subr.bf16.mxu0 %v491_v37  ;;  %v14_v23 = vld [vmem:[%s2827_s0 + $0x10] sm:$0xff]  ;;  %v468_v25 = vpack.c.bf16 %v386_v19, %v384_v18  ;;  %v23_v26 = vld [vmem:[%s2827_s0 + $0x58] sm:$0xff]  ;;  %v471_v28 = vpack.c.bf16 %v391_v21, %v389_v20  ;;  %v388_v29 = vld [vmem:[%s2826_s1 + $0x1a0] sm:$0xff] }
  0x24   :  { %v18_v24 = vld [vmem:[%s2827_s0 + $0x30] sm:$0xff]  ;;  %v27_v27 = vld [vmem:[%s2827_s0 + $0x78] sm:$0xff]  ;;  %v393_v31 = vld [vmem:[%s2826_s1 + $0x1c8] sm:$0xff] }
  0x25   :  { %597 = vmatpush1.bf16.msra.mxu1 %v460_v35  ;;  %v390_v30 = vld [vmem:[%s2826_s1 + $0x1b0] sm:$0xff]  ;;  %v395_v32 = vld [vmem:[%s2826_s1 + $0x1d8] sm:$0xff]  ;;  %v230_v33 = vpack.c.bf16 %v18_v24, %v14_v23  ;;  %v235_v34 = vpack.c.bf16 %v27_v27, %v23_v26  ;;  %v392_v37 = vld [vmem:[%s2826_s1 + $0x1c0] sm:$0xff] }
  0x26   :  { %598 = vmatprep.subr.bf16.mxu1 %v463_v40  ;;  %898 = vmatpush1.bf16.msra.mxu0 %v490_v48  ;;  %v470_v35 = vpack.c.bf16 %v390_v30, %v388_v29  ;;  %v473_v36 = vpack.c.bf16 %v395_v32, %v393_v31  ;;  %v394_v38 = vld [vmem:[%s2826_s1 + $0x1d0] sm:$0xff]  ;;  %v397_v39 = vld [vmem:[%s2826_s1 + $0x1e8] sm:$0xff]  ;;  %v399_v40 = vld [vmem:[%s2826_s1 + $0x1f8] sm:$0xff] }
  0x27   :  { %899 = vmatprep.subr.bf16.mxu0 %v493_v52  ;;  %v22_v41 = vld [vmem:[%s2827_s0 + $0x50] sm:$0xff]  ;;  %v472_v43 = vpack.c.bf16 %v394_v38, %v392_v37  ;;  %v31_v44 = vld [vmem:[%s2827_s0 + $0x98] sm:$0xff]  ;;  %v475_v46 = vpack.c.bf16 %v399_v40, %v397_v39  ;;  %v396_v47 = vld [vmem:[%s2826_s1 + $0x1e0] sm:$0xff] }
  0x28   :  { %v26_v42 = vld [vmem:[%s2827_s0 + $0x70] sm:$0xff]  ;;  %v35_v45 = vld [vmem:[%s2827_s0 + $0xb8] sm:$0xff]  ;;  %v12_v52 = vld [vmem:[%s2827_s0] sm:$0xff] }
  0x29   :  { %599 = vmatpush1.bf16.msra.mxu1 %v462_v51  ;;  %v398_v48 = vld [vmem:[%s2826_s1 + $0x1f0] sm:$0xff]  ;;  %v234_v49 = vpack.c.bf16 %v26_v42, %v22_v41  ;;  %v239_v50 = vpack.c.bf16 %v35_v45, %v31_v44  ;;  %v16_v53 = vld [vmem:[%s2827_s0 + $0x20] sm:$0xff]  ;;  %v21_v54 = vld [vmem:[%s2827_s0 + $0x48] sm:$0xff] }
  0x2a   :  { %600 = vmatprep.subr.bf16.mxu1 %v465_v57  ;;  %900 = vmatpush1.bf16.msra.mxu0 %v492_v0  ;;  %v474_v51 = vpack.c.bf16 %v398_v48, %v396_v47  ;;  %v25_v55 = vld [vmem:[%s2827_s0 + $0x68] sm:$0xff]  ;;  %v228_v56 = vpack.c.bf16 %v16_v53, %v12_v52  ;;  %v30_v57 = vld [vmem:[%s2827_s0 + $0x90] sm:$0xff]  ;;  %v39_v60 = vld [vmem:[%s2827_s0 + $0xd8] sm:$0xff] }
  0x2b   :  { %901 = vmatprep.subr.bf16.mxu0 %v495_v3  ;;  %v34_v58 = vld [vmem:[%s2827_s0 + $0xb0] sm:$0xff]  ;;  %v233_v59 = vpack.c.bf16 %v25_v55, %v21_v54  ;;  %v43_v61 = vld [vmem:[%s2827_s0 + $0xf8] sm:$0xff]  ;;  %v20_v0 = vld [vmem:[%s2827_s0 + $0x40] sm:$0xff] }
  0x2c   :  { %v238_v62 = vpack.c.bf16 %v34_v58, %v30_v57  ;;  %v243_v63 = vpack.c.bf16 %v43_v61, %v39_v60  ;;  %v29_v2 = vld [vmem:[%s2827_s0 + $0x88] sm:$0xff]  ;;  %v38_v5 = vld [vmem:[%s2827_s0 + $0xd0] sm:$0xff]  ;;  %v47_v8 = vld [vmem:[%s2827_s0 + $0x118] sm:$0xff] }
  0x2d   :  { %601 = vmatpush1.bf16.msra.mxu1 %v464_v1  ;;  %v24_v1 = vld [vmem:[%s2827_s0 + $0x60] sm:$0xff]  ;;  %v33_v3 = vld [vmem:[%s2827_s0 + $0xa8] sm:$0xff]  ;;  %v51_v9 = vld [vmem:[%s2827_s0 + $0x138] sm:$0xff] }
  0x2e   :  { %602 = vmatprep.subr.bf16.mxu1 %v467_v6  ;;  %902 = vmatpush1.bf16.msra.mxu0 %v494_v12  ;;  %v232_v4 = vpack.c.bf16 %v24_v1, %v20_v0  ;;  %v42_v6 = vld [vmem:[%s2827_s0 + $0xf0] sm:$0xff]  ;;  %v237_v7 = vpack.c.bf16 %v33_v3, %v29_v2  ;;  %v247_v11 = vpack.c.bf16 %v51_v9, %v47_v8  ;;  %v28_v12 = vld [vmem:[%s2827_s0 + $0x80] sm:$0xff]  ;;  %v41_v15 = vld [vmem:[%s2827_s0 + $0xe8] sm:$0xff] }
  0x2f   :  { %903 = vmatprep.subr.bf16.mxu0 %v497_v14  ;;  %v242_v10 = vpack.c.bf16 %v42_v6, %v38_v5  ;;  %v37_v14 = vld [vmem:[%s2827_s0 + $0xc8] sm:$0xff]  ;;  %v50_v18 = vld [vmem:[%s2827_s0 + $0x130] sm:$0xff]  ;;  %v55_v20 = vld [vmem:[%s2827_s0 + $0x158] sm:$0xff] }
  0x30   :  { %v241_v19 = vpack.c.bf16 %v41_v15, %v37_v14  ;;  %v59_v21 = vld [vmem:[%s2827_s0 + $0x178] sm:$0xff]  ;;  %v36_v24 = vld [vmem:[%s2827_s0 + $0xc0] sm:$0xff]  ;;  %v45_v26 = vld [vmem:[%s2827_s0 + $0x108] sm:$0xff] }
  0x31   :  { %603 = vmatpush1.bf16.msra.mxu1 %v466_v13  ;;  %v32_v13 = vld [vmem:[%s2827_s0 + $0xa0] sm:$0xff]  ;;  %v251_v23 = vpack.c.bf16 %v59_v21, %v55_v20  ;;  %v49_v27 = vld [vmem:[%s2827_s0 + $0x128] sm:$0xff]  ;;  %v54_v29 = vld [vmem:[%s2827_s0 + $0x150] sm:$0xff] }
  0x32   :  { %604 = vmatprep.subr.bf16.mxu1 %v469_v17  ;;  %904 = vmatpush1.bf16.msra.mxu0 %v496_v22  ;;  %v236_v16 = vpack.c.bf16 %v32_v13, %v28_v12  ;;  %v46_v17 = vld [vmem:[%s2827_s0 + $0x110] sm:$0xff]  ;;  %v245_v31 = vpack.c.bf16 %v49_v27, %v45_v26  ;;  %v63_v32 = vld [vmem:[%s2827_s0 + $0x198] sm:$0xff]  ;;  %v48_v37 = vld [vmem:[%s2827_s0 + $0x120] sm:$0xff] }
  0x33   :  { %v246_v22 = vpack.c.bf16 %v50_v18, %v46_v17  ;;  %v58_v30 = vld [vmem:[%s2827_s0 + $0x170] sm:$0xff]  ;;  %v53_v38 = vld [vmem:[%s2827_s0 + $0x148] sm:$0xff]  ;;  %v71_v44 = vld [vmem:[%s2827_s0 + $0x1d8] sm:$0xff] }
  0x34   :  { %v57_v39 = vld [vmem:[%s2827_s0 + $0x168] sm:$0xff]  ;;  %v62_v41 = vld [vmem:[%s2827_s0 + $0x190] sm:$0xff]  ;;  %v75_v45 = vld [vmem:[%s2827_s0 + $0x1f8] sm:$0xff] }
  0x35   :  { %605 = vmatpush1.bf16.msra.mxu1 %v468_v25  ;;  %916 = vmatmul.mubr.bf16.vlgmr.msra.gmra.mrb[0].mxu0 %v230_v33  ;;  %v40_v25 = vld [vmem:[%s2827_s0 + $0xe0] sm:$0xff]  ;;  %v67_v33 = vld [vmem:[%s2827_s0 + $0x1b8] sm:$0xff]  ;;  %v66_v42 = vld [vmem:[%s2827_s0 + $0x1b0] sm:$0xff]  ;;  %v259_v47 = vpack.c.bf16 %v75_v45, %v71_v44 }
  0x36   :  { %606 = vmatprep.subr.bf16.mxu1 %v471_v28  ;;  %1300 = vmatprep.mubr.msk.bf16.mxu0 %vm498_vm0, %v235_v34  ;;  %v240_v28 = vpack.c.bf16 %v40_v25, %v36_v24  ;;  %v250_v34 = vpack.c.bf16 %v58_v30, %v54_v29  ;;  %v52_v48 = vld [vmem:[%s2827_s0 + $0x140] sm:$0xff]  ;;  %v70_v53 = vld [vmem:[%s2827_s0 + $0x1d0] sm:$0xff]  ;;  %v83_v57 = vld [vmem:[%s2827_s0 + $0x238] sm:$0xff] }
  0x37   :  { %v74_v54 = vld [vmem:[%s2827_s0 + $0x1f0] sm:$0xff]  ;;  %v60_v60 = vld [vmem:[%s2827_s0 + $0x180] sm:$0xff]  ;;  %v91_v5 = vld [vmem:[%s2827_s0 + $0x278] sm:$0xff] }
  0x38   :  { %v258_v58 = vpack.c.bf16 %v74_v54, %v70_v53  ;;  %v64_v61 = vld [vmem:[%s2827_s0 + $0x1a0] sm:$0xff]  ;;  %v78_v1 = vld [vmem:[%s2827_s0 + $0x210] sm:$0xff]  ;;  %v99_v17 = vld [vmem:[%s2827_s0 + $0x2b8] sm:$0xff] }
  0x39   :  { %607 = vmatpush1.bf16.msra.mxu1 %v470_v35  ;;  %v255_v35 = vpack.c.bf16 %v67_v33, %v63_v32  ;;  %v252_v0 = vpack.c.bf16 %v64_v61, %v60_v60  ;;  %v82_v2 = vld [vmem:[%s2827_s0 + $0x230] sm:$0xff]  ;;  %v68_v8 = vld [vmem:[%s2827_s0 + $0x1c0] sm:$0xff]  ;;  %v107_v29 = vld [vmem:[%s2827_s0 + $0x2f8] sm:$0xff] }
  0x3a   :  { %608 = vmatprep.subr.bf16.mxu1 %v473_v36  ;;  %v44_v36 = vld [vmem:[%s2827_s0 + $0x100] sm:$0xff]  ;;  %v262_v6 = vpack.c.bf16 %v82_v2, %v78_v1  ;;  %v86_v13 = vld [vmem:[%s2827_s0 + $0x250] sm:$0xff]  ;;  %v123_v53 = vld [vmem:[%s2827_s0 + $0x378] sm:$0xff] }
  0x3b   :  { %v244_v40 = vpack.c.bf16 %v48_v37, %v44_v36  ;;  %v72_v9 = vld [vmem:[%s2827_s0 + $0x1e0] sm:$0xff]  ;;  %v90_v14 = vld [vmem:[%s2827_s0 + $0x270] sm:$0xff]  ;;  %v131_v1 = vld [vmem:[%s2827_s0 + $0x3b8] sm:$0xff] }
  0x3c   :  { %v256_v12 = vpack.c.bf16 %v72_v9, %v68_v8  ;;  %v266_v18 = vpack.c.bf16 %v90_v14, %v86_v13  ;;  %v76_v20 = vld [vmem:[%s2827_s0 + $0x200] sm:$0xff]  ;;  %v94_v25 = vld [vmem:[%s2827_s0 + $0x290] sm:$0xff]  ;;  %v139_v13 = vld [vmem:[%s2827_s0 + $0x3f8] sm:$0xff] }
  0x3d   :  { %609 = vmatpush1.bf16.msra.mxu1 %v472_v43  ;;  %926 = vmatmul.mubr.bf16.gmra.mrb[4].mxu0 %v234_v49  ;;  %v249_v43 = vpack.c.bf16 %v57_v39, %v53_v38  ;;  %v56_v49 = vld [vmem:[%s2827_s0 + $0x160] sm:$0xff]  ;;  %v98_v26 = vld [vmem:[%s2827_s0 + $0x2b0] sm:$0xff] }
  0x3e   :  { %610 = vmatprep.subr.bf16.mxu1 %v475_v46  ;;  %1301 = vmatprep.mubr.msk.bf16.mxu0 %vm498_vm0, %v239_v50  ;;  %v254_v46 = vpack.c.bf16 %v66_v42, %v62_v41  ;;  %v61_v50 = vld [vmem:[%s2827_s0 + $0x188] sm:$0xff]  ;;  %v248_v52 = vpack.c.bf16 %v56_v49, %v52_v48  ;;  %v80_v21 = vld [vmem:[%s2827_s0 + $0x220] sm:$0xff]  ;;  %v270_v30 = vpack.c.bf16 %v98_v26, %v94_v25  ;;  %v102_v37 = vld [vmem:[%s2827_s0 + $0x2d0] sm:$0xff] }
  0x3f   :  { %v260_v24 = vpack.c.bf16 %v80_v21, %v76_v20  ;;  %v84_v32 = vld [vmem:[%s2827_s0 + $0x240] sm:$0xff]  ;;  %v106_v38 = vld [vmem:[%s2827_s0 + $0x2f0] sm:$0xff]  ;;  %v115_v41 = vld [vmem:[%s2827_s0 + $0x338] sm:$0xff] }
  0x40   :  { %v88_v33 = vld [vmem:[%s2827_s0 + $0x260] sm:$0xff]  ;;  %v274_v42 = vpack.c.bf16 %v106_v38, %v102_v37  ;;  %v110_v49 = vld [vmem:[%s2827_s0 + $0x310] sm:$0xff]  ;;  %v147_v25 = vld [vmem:[%s2827_s0 + $0x438] sm:$0xff] }
  0x41   :  { %611 = vmatpush1.bf16.msra.mxu1 %v474_v51  ;;  %v65_v51 = vld [vmem:[%s2827_s0 + $0x1a8] sm:$0xff]  ;;  %v264_v36 = vpack.c.bf16 %v88_v33, %v84_v32  ;;  %v92_v44 = vld [vmem:[%s2827_s0 + $0x280] sm:$0xff]  ;;  %v118_v61 = vld [vmem:[%s2827_s0 + $0x350] sm:$0xff] }
  0x42   :  { %v253_v55 = vpack.c.bf16 %v65_v51, %v61_v50  ;;  %v96_v45 = vld [vmem:[%s2827_s0 + $0x2a0] sm:$0xff]  ;;  %v114_v50 = vld [vmem:[%s2827_s0 + $0x330] sm:$0xff]  ;;  %v155_v37 = vld [vmem:[%s2827_s0 + $0x478] sm:$0xff] }
  0x43   :  { %v268_v48 = vpack.c.bf16 %v96_v45, %v92_v44  ;;  %v278_v54 = vpack.c.bf16 %v114_v50, %v110_v49  ;;  %v126_v9 = vld [vmem:[%s2827_s0 + $0x390] sm:$0xff]  ;;  %v163_v49 = vld [vmem:[%s2827_s0 + $0x4b8] sm:$0xff] }
  0x44   :  { %613 = vmatmul.mubr.bf16.vlgmr.msra.gmra.mrb[0].mxu1 %v228_v56  ;;  %v79_v56 = vld [vmem:[%s2827_s0 + $0x218] sm:$0xff]  ;;  %v134_v21 = vld [vmem:[%s2827_s0 + $0x3d0] sm:$0xff] }
  0x45   :  { %622 = vmatprep.mubr.bf16.mxu1 %v233_v59  ;;  %936 = vmatmul.mubr.bf16.gmra.mrb[8].mxu0 %v238_v62  ;;  %v263_v59 = vpack.c.bf16 %v83_v57, %v79_v56  ;;  %v69_v62 = vld [vmem:[%s2827_s0 + $0x1c8] sm:$0xff]  ;;  %v100_v56 = vld [vmem:[%s2827_s0 + $0x2c0] sm:$0xff]  ;;  %v142_v33 = vld [vmem:[%s2827_s0 + $0x410] sm:$0xff] }
  0x46   :  { %1302 = vmatprep.mubr.msk.bf16.mxu0 %vm498_vm0, %v243_v63  ;;  %v73_v63 = vld [vmem:[%s2827_s0 + $0x1e8] sm:$0xff]  ;;  %v104_v57 = vld [vmem:[%s2827_s0 + $0x2e0] sm:$0xff]  ;;  %v150_v45 = vld [vmem:[%s2827_s0 + $0x450] sm:$0xff] }
  0x47   :  { %v257_v3 = vpack.c.bf16 %v73_v63, %v69_v62  ;;  %v272_v60 = vpack.c.bf16 %v104_v57, %v100_v56  ;;  %v122_v62 = vld [vmem:[%s2827_s0 + $0x370] sm:$0xff] }
  0x48   :  { %v282_v2 = vpack.c.bf16 %v122_v62, %v118_v61  ;;  %v158_v57 = vld [vmem:[%s2827_s0 + $0x490] sm:$0xff]  ;;  %v171_v61 = vld [vmem:[%s2827_s0 + $0x4f8] sm:$0xff] }
  0x4c   :  { %623 = vmatmul.mubr.bf16.gmra.mrb[4].mxu1 %v232_v4  ;;  %v87_v4 = vld [vmem:[%s2827_s0 + $0x258] sm:$0xff] }
  0x4d   :  { %632 = vmatprep.mubr.bf16.mxu1 %v237_v7  ;;  %946 = vmatmul.mubr.bf16.gmra.mrb[12].mxu0 %v242_v10  ;;  %v267_v7 = vpack.c.bf16 %v91_v5, %v87_v4  ;;  %v77_v10 = vld [vmem:[%s2827_s0 + $0x208] sm:$0xff]  ;;  %v108_v4 = vld [vmem:[%s2827_s0 + $0x300] sm:$0xff] }
  0x4e   :  { %1303 = vmatprep.mubr.msk.bf16.mxu0 %vm498_vm0, %v247_v11  ;;  %v81_v11 = vld [vmem:[%s2827_s0 + $0x228] sm:$0xff]  ;;  %v112_v5 = vld [vmem:[%s2827_s0 + $0x320] sm:$0xff] }
  0x4f   :  { %v261_v15 = vpack.c.bf16 %v81_v11, %v77_v10  ;;  %v276_v8 = vpack.c.bf16 %v112_v5, %v108_v4  ;;  %v130_v10 = vld [vmem:[%s2827_s0 + $0x3b0] sm:$0xff] }
  0x50   :  { %v286_v14 = vpack.c.bf16 %v130_v10, %v126_v9  ;;  %v166_v5 = vld [vmem:[%s2827_s0 + $0x4d0] sm:$0xff]  ;;  %v179_v9 = vld [vmem:[%s2827_s0 + $0x538] sm:$0xff] }
  0x54   :  { %633 = vmatmul.mubr.bf16.gmra.mrb[8].mxu1 %v236_v16  ;;  %v95_v16 = vld [vmem:[%s2827_s0 + $0x298] sm:$0xff] }
  0x55   :  { %642 = vmatprep.mubr.bf16.mxu1 %v241_v19  ;;  %956 = vmatmul.mubr.bf16.gmra.mrb[16].mxu0 %v246_v22  ;;  %v271_v19 = vpack.c.bf16 %v99_v17, %v95_v16  ;;  %v85_v22 = vld [vmem:[%s2827_s0 + $0x248] sm:$0xff]  ;;  %v116_v16 = vld [vmem:[%s2827_s0 + $0x340] sm:$0xff] }
  0x56   :  { %1304 = vmatprep.mubr.msk.bf16.mxu0 %vm498_vm0, %v251_v23  ;;  %v89_v23 = vld [vmem:[%s2827_s0 + $0x268] sm:$0xff]  ;;  %v120_v17 = vld [vmem:[%s2827_s0 + $0x360] sm:$0xff] }
  0x57   :  { %v265_v27 = vpack.c.bf16 %v89_v23, %v85_v22  ;;  %v280_v20 = vpack.c.bf16 %v120_v17, %v116_v16  ;;  %v138_v22 = vld [vmem:[%s2827_s0 + $0x3f0] sm:$0xff] }
  0x58   :  { %v290_v26 = vpack.c.bf16 %v138_v22, %v134_v21  ;;  %v174_v17 = vld [vmem:[%s2827_s0 + $0x510] sm:$0xff]  ;;  %v187_v21 = vld [vmem:[%s2827_s0 + $0x578] sm:$0xff] }
  0x5c   :  { %643 = vmatmul.mubr.bf16.gmra.mrb[12].mxu1 %v240_v28  ;;  %v103_v28 = vld [vmem:[%s2827_s0 + $0x2d8] sm:$0xff] }
  0x5d   :  { %652 = vmatprep.mubr.bf16.mxu1 %v245_v31  ;;  %966 = vmatmul.mubr.bf16.gmra.mrb[20].mxu0 %v250_v34  ;;  %v275_v31 = vpack.c.bf16 %v107_v29, %v103_v28  ;;  %v93_v34 = vld [vmem:[%s2827_s0 + $0x288] sm:$0xff]  ;;  %v124_v28 = vld [vmem:[%s2827_s0 + $0x380] sm:$0xff] }
  0x5e   :  { %1305 = vmatprep.mubr.msk.bf16.mxu0 %vm498_vm0, %v255_v35  ;;  %v97_v35 = vld [vmem:[%s2827_s0 + $0x2a8] sm:$0xff]  ;;  %v128_v29 = vld [vmem:[%s2827_s0 + $0x3a0] sm:$0xff] }
  0x5f   :  { %v269_v39 = vpack.c.bf16 %v97_v35, %v93_v34  ;;  %v284_v32 = vpack.c.bf16 %v128_v29, %v124_v28  ;;  %v146_v34 = vld [vmem:[%s2827_s0 + $0x430] sm:$0xff] }
  0x60   :  { %v294_v38 = vpack.c.bf16 %v146_v34, %v142_v33  ;;  %v182_v29 = vld [vmem:[%s2827_s0 + $0x550] sm:$0xff]  ;;  %v195_v33 = vld [vmem:[%s2827_s0 + $0x5b8] sm:$0xff] }
  0x64   :  { %653 = vmatmul.mubr.bf16.gmra.mrb[16].mxu1 %v244_v40  ;;  %v111_v40 = vld [vmem:[%s2827_s0 + $0x318] sm:$0xff] }
  0x65   :  { %662 = vmatprep.mubr.bf16.mxu1 %v249_v43  ;;  %976 = vmatmul.mubr.bf16.gmra.mrb[24].mxu0 %v254_v46  ;;  %v279_v43 = vpack.c.bf16 %v115_v41, %v111_v40  ;;  %v101_v46 = vld [vmem:[%s2827_s0 + $0x2c8] sm:$0xff]  ;;  %v132_v40 = vld [vmem:[%s2827_s0 + $0x3c0] sm:$0xff] }
  0x66   :  { %1306 = vmatprep.mubr.msk.bf16.mxu0 %vm498_vm0, %v259_v47  ;;  %v105_v47 = vld [vmem:[%s2827_s0 + $0x2e8] sm:$0xff]  ;;  %v136_v41 = vld [vmem:[%s2827_s0 + $0x3e0] sm:$0xff] }
  0x67   :  { %v273_v51 = vpack.c.bf16 %v105_v47, %v101_v46  ;;  %v288_v44 = vpack.c.bf16 %v136_v41, %v132_v40  ;;  %v154_v46 = vld [vmem:[%s2827_s0 + $0x470] sm:$0xff] }
  0x68   :  { %v298_v50 = vpack.c.bf16 %v154_v46, %v150_v45  ;;  %v190_v41 = vld [vmem:[%s2827_s0 + $0x590] sm:$0xff]  ;;  %v203_v45 = vld [vmem:[%s2827_s0 + $0x5f8] sm:$0xff] }
  0x6c   :  { %663 = vmatmul.mubr.bf16.gmra.mrb[20].mxu1 %v248_v52  ;;  %v119_v52 = vld [vmem:[%s2827_s0 + $0x358] sm:$0xff] }
  0x6d   :  { %672 = vmatprep.mubr.bf16.mxu1 %v253_v55  ;;  %986 = vmatmul.mubr.bf16.gmra.mrb[28].mxu0 %v258_v58  ;;  %v283_v55 = vpack.c.bf16 %v123_v53, %v119_v52  ;;  %v109_v58 = vld [vmem:[%s2827_s0 + $0x308] sm:$0xff]  ;;  %v140_v52 = vld [vmem:[%s2827_s0 + $0x400] sm:$0xff] }
  0x6e   :  { %1307 = vmatprep.mubr.msk.bf16.mxu0 %vm498_vm0, %v263_v59  ;;  %v113_v59 = vld [vmem:[%s2827_s0 + $0x328] sm:$0xff]  ;;  %v144_v53 = vld [vmem:[%s2827_s0 + $0x420] sm:$0xff] }
  0x6f   :  { %v277_v63 = vpack.c.bf16 %v113_v59, %v109_v58  ;;  %v292_v56 = vpack.c.bf16 %v144_v53, %v140_v52  ;;  %v162_v58 = vld [vmem:[%s2827_s0 + $0x4b0] sm:$0xff] }
  0x70   :  { %v302_v62 = vpack.c.bf16 %v162_v58, %v158_v57  ;;  %v198_v53 = vld [vmem:[%s2827_s0 + $0x5d0] sm:$0xff]  ;;  %v211_v57 = vld [vmem:[%s2827_s0 + $0x638] sm:$0xff] }
  0x74   :  { %673 = vmatmul.mubr.bf16.gmra.mrb[24].mxu1 %v252_v0  ;;  %v127_v0 = vld [vmem:[%s2827_s0 + $0x398] sm:$0xff] }
  0x75   :  { %682 = vmatprep.mubr.bf16.mxu1 %v257_v3  ;;  %996 = vmatmul.mubr.bf16.gmra.mrb[32].mxu0 %v262_v6  ;;  %v287_v3 = vpack.c.bf16 %v131_v1, %v127_v0  ;;  %v117_v6 = vld [vmem:[%s2827_s0 + $0x348] sm:$0xff]  ;;  %v148_v0 = vld [vmem:[%s2827_s0 + $0x440] sm:$0xff] }
  0x76   :  { %1308 = vmatprep.mubr.msk.bf16.mxu0 %vm498_vm0, %v267_v7  ;;  %v121_v7 = vld [vmem:[%s2827_s0 + $0x368] sm:$0xff]  ;;  %v152_v1 = vld [vmem:[%s2827_s0 + $0x460] sm:$0xff] }
  0x77   :  { %v281_v11 = vpack.c.bf16 %v121_v7, %v117_v6  ;;  %v296_v4 = vpack.c.bf16 %v152_v1, %v148_v0  ;;  %v170_v6 = vld [vmem:[%s2827_s0 + $0x4f0] sm:$0xff] }
  0x78   :  { %v306_v10 = vpack.c.bf16 %v170_v6, %v166_v5  ;;  %v206_v1 = vld [vmem:[%s2827_s0 + $0x610] sm:$0xff]  ;;  %v219_v5 = vld [vmem:[%s2827_s0 + $0x678] sm:$0xff] }
  0x7c   :  { %683 = vmatmul.mubr.bf16.gmra.mrb[28].mxu1 %v256_v12  ;;  %v135_v12 = vld [vmem:[%s2827_s0 + $0x3d8] sm:$0xff] }
  0x7d   :  { %692 = vmatprep.mubr.bf16.mxu1 %v261_v15  ;;  %1006 = vmatmul.mubr.bf16.gmra.mrb[36].mxu0 %v266_v18  ;;  %v291_v15 = vpack.c.bf16 %v139_v13, %v135_v12  ;;  %v125_v18 = vld [vmem:[%s2827_s0 + $0x388] sm:$0xff]  ;;  %v156_v12 = vld [vmem:[%s2827_s0 + $0x480] sm:$0xff] }
  0x7e   :  { %1309 = vmatprep.mubr.msk.bf16.mxu0 %vm498_vm0, %v271_v19  ;;  %v129_v19 = vld [vmem:[%s2827_s0 + $0x3a8] sm:$0xff]  ;;  %v160_v13 = vld [vmem:[%s2827_s0 + $0x4a0] sm:$0xff] }
  0x7f   :  { %v285_v23 = vpack.c.bf16 %v129_v19, %v125_v18  ;;  %v300_v16 = vpack.c.bf16 %v160_v13, %v156_v12  ;;  %v178_v18 = vld [vmem:[%s2827_s0 + $0x530] sm:$0xff] }
  0x80   :  { %v310_v22 = vpack.c.bf16 %v178_v18, %v174_v17  ;;  %v214_v13 = vld [vmem:[%s2827_s0 + $0x650] sm:$0xff]  ;;  %v227_v17 = vld [vmem:[%s2827_s0 + $0x6b8] sm:$0xff] }
  0x84   :  { %693 = vmatmul.mubr.bf16.gmra.mrb[32].mxu1 %v260_v24  ;;  %v143_v24 = vld [vmem:[%s2827_s0 + $0x418] sm:$0xff] }
  0x85   :  { %702 = vmatprep.mubr.bf16.mxu1 %v265_v27  ;;  %1016 = vmatmul.mubr.bf16.gmra.mrb[40].mxu0 %v270_v30  ;;  %v295_v27 = vpack.c.bf16 %v147_v25, %v143_v24  ;;  %v133_v30 = vld [vmem:[%s2827_s0 + $0x3c8] sm:$0xff]  ;;  %v164_v24 = vld [vmem:[%s2827_s0 + $0x4c0] sm:$0xff] }
  0x86   :  { %1310 = vmatprep.mubr.msk.bf16.mxu0 %vm498_vm0, %v275_v31  ;;  %v137_v31 = vld [vmem:[%s2827_s0 + $0x3e8] sm:$0xff]  ;;  %v168_v25 = vld [vmem:[%s2827_s0 + $0x4e0] sm:$0xff] }
  0x87   :  { %v289_v35 = vpack.c.bf16 %v137_v31, %v133_v30  ;;  %v304_v28 = vpack.c.bf16 %v168_v25, %v164_v24  ;;  %v186_v30 = vld [vmem:[%s2827_s0 + $0x570] sm:$0xff] }
  0x88   :  { %v314_v34 = vpack.c.bf16 %v186_v30, %v182_v29  ;;  %v222_v25 = vld [vmem:[%s2827_s0 + $0x690] sm:$0xff]  ;;  %v212_v29 = vld [vmem:[%s2827_s0 + $0x640] sm:$0xff] }
  0x89   :  { %v216_v30 = vld [vmem:[%s2827_s0 + $0x660] sm:$0xff] }
  0x8c   :  { %703 = vmatmul.mubr.bf16.gmra.mrb[36].mxu1 %v264_v36  ;;  %v151_v36 = vld [vmem:[%s2827_s0 + $0x458] sm:$0xff] }
  0x8d   :  { %712 = vmatprep.mubr.bf16.mxu1 %v269_v39  ;;  %1026 = vmatmul.mubr.bf16.gmra.mrb[44].mxu0 %v274_v42  ;;  %v299_v39 = vpack.c.bf16 %v155_v37, %v151_v36  ;;  %v141_v42 = vld [vmem:[%s2827_s0 + $0x408] sm:$0xff]  ;;  %v172_v36 = vld [vmem:[%s2827_s0 + $0x500] sm:$0xff] }
  0x8e   :  { %1311 = vmatprep.mubr.msk.bf16.mxu0 %vm498_vm0, %v279_v43  ;;  %v145_v43 = vld [vmem:[%s2827_s0 + $0x428] sm:$0xff]  ;;  %v176_v37 = vld [vmem:[%s2827_s0 + $0x520] sm:$0xff] }
  0x8f   :  { %v293_v47 = vpack.c.bf16 %v145_v43, %v141_v42  ;;  %v308_v40 = vpack.c.bf16 %v176_v37, %v172_v36  ;;  %v194_v42 = vld [vmem:[%s2827_s0 + $0x5b0] sm:$0xff] }
  0x90   :  { %v318_v46 = vpack.c.bf16 %v194_v42, %v190_v41 }
  0x94   :  { %713 = vmatmul.mubr.bf16.gmra.mrb[40].mxu1 %v268_v48  ;;  %v159_v48 = vld [vmem:[%s2827_s0 + $0x498] sm:$0xff] }
  0x95   :  { %722 = vmatprep.mubr.bf16.mxu1 %v273_v51  ;;  %1036 = vmatmul.mubr.bf16.gmra.mrb[48].mxu0 %v278_v54  ;;  %v303_v51 = vpack.c.bf16 %v163_v49, %v159_v48  ;;  %v149_v54 = vld [vmem:[%s2827_s0 + $0x448] sm:$0xff]  ;;  %v180_v48 = vld [vmem:[%s2827_s0 + $0x540] sm:$0xff] }
  0x96   :  { %1312 = vmatprep.mubr.msk.bf16.mxu0 %vm498_vm0, %v283_v55  ;;  %v153_v55 = vld [vmem:[%s2827_s0 + $0x468] sm:$0xff]  ;;  %v184_v49 = vld [vmem:[%s2827_s0 + $0x560] sm:$0xff] }
  0x97   :  { %v297_v59 = vpack.c.bf16 %v153_v55, %v149_v54  ;;  %v312_v52 = vpack.c.bf16 %v184_v49, %v180_v48  ;;  %v202_v54 = vld [vmem:[%s2827_s0 + $0x5f0] sm:$0xff] }
  0x98   :  { %v322_v58 = vpack.c.bf16 %v202_v54, %v198_v53 }
  0x9c   :  { %723 = vmatmul.mubr.bf16.gmra.mrb[44].mxu1 %v272_v60  ;;  %v167_v60 = vld [vmem:[%s2827_s0 + $0x4d8] sm:$0xff] }
  0x9d   :  { %732 = vmatprep.mubr.bf16.mxu1 %v277_v63  ;;  %1046 = vmatmul.mubr.bf16.gmra.mrb[52].mxu0 %v282_v2  ;;  %v307_v63 = vpack.c.bf16 %v171_v61, %v167_v60  ;;  %v157_v2 = vld [vmem:[%s2827_s0 + $0x488] sm:$0xff]  ;;  %v188_v60 = vld [vmem:[%s2827_s0 + $0x580] sm:$0xff] }
  0x9e   :  { %1313 = vmatprep.mubr.msk.bf16.mxu0 %vm498_vm0, %v287_v3  ;;  %v161_v3 = vld [vmem:[%s2827_s0 + $0x4a8] sm:$0xff]  ;;  %v192_v61 = vld [vmem:[%s2827_s0 + $0x5a0] sm:$0xff] }
  0x9f   :  { %v301_v7 = vpack.c.bf16 %v161_v3, %v157_v2  ;;  %v316_v0 = vpack.c.bf16 %v192_v61, %v188_v60  ;;  %v210_v2 = vld [vmem:[%s2827_s0 + $0x630] sm:$0xff] }
  0xa0   :  { %v326_v6 = vpack.c.bf16 %v210_v2, %v206_v1 }
  0xa4   :  { %733 = vmatmul.mubr.bf16.gmra.mrb[48].mxu1 %v276_v8  ;;  %v175_v8 = vld [vmem:[%s2827_s0 + $0x518] sm:$0xff] }
  0xa5   :  { %742 = vmatprep.mubr.bf16.mxu1 %v281_v11  ;;  %1056 = vmatmul.mubr.bf16.gmra.mrb[56].mxu0 %v286_v14  ;;  %v311_v11 = vpack.c.bf16 %v179_v9, %v175_v8  ;;  %v165_v14 = vld [vmem:[%s2827_s0 + $0x4c8] sm:$0xff]  ;;  %v196_v8 = vld [vmem:[%s2827_s0 + $0x5c0] sm:$0xff] }
  0xa6   :  { %1314 = vmatprep.mubr.msk.bf16.mxu0 %vm498_vm0, %v291_v15  ;;  %v169_v15 = vld [vmem:[%s2827_s0 + $0x4e8] sm:$0xff]  ;;  %v200_v9 = vld [vmem:[%s2827_s0 + $0x5e0] sm:$0xff] }
  0xa7   :  { %v305_v19 = vpack.c.bf16 %v169_v15, %v165_v14  ;;  %v320_v12 = vpack.c.bf16 %v200_v9, %v196_v8  ;;  %v218_v14 = vld [vmem:[%s2827_s0 + $0x670] sm:$0xff] }
  0xa8   :  { %v330_v18 = vpack.c.bf16 %v218_v14, %v214_v13 }
  0xac   :  { %743 = vmatmul.mubr.bf16.gmra.mrb[52].mxu1 %v280_v20  ;;  %v183_v20 = vld [vmem:[%s2827_s0 + $0x558] sm:$0xff] }
  0xad   :  { %752 = vmatprep.mubr.bf16.mxu1 %v285_v23  ;;  %1066 = vmatmul.mubr.bf16.gmra.mrb[60].mxu0 %v290_v26  ;;  %v315_v23 = vpack.c.bf16 %v187_v21, %v183_v20  ;;  %v173_v26 = vld [vmem:[%s2827_s0 + $0x508] sm:$0xff]  ;;  %v204_v20 = vld [vmem:[%s2827_s0 + $0x600] sm:$0xff] }
  0xae   :  { %1315 = vmatprep.mubr.msk.bf16.mxu0 %vm498_vm0, %v295_v27  ;;  %v177_v27 = vld [vmem:[%s2827_s0 + $0x528] sm:$0xff]  ;;  %v208_v21 = vld [vmem:[%s2827_s0 + $0x620] sm:$0xff] }
  0xaf   :  { %v309_v31 = vpack.c.bf16 %v177_v27, %v173_v26  ;;  %v324_v24 = vpack.c.bf16 %v208_v21, %v204_v20  ;;  %v226_v26 = vld [vmem:[%s2827_s0 + $0x6b0] sm:$0xff] }
  0xb4   :  { %753 = vmatmul.mubr.bf16.gmra.mrb[56].mxu1 %v284_v32  ;;  %v191_v32 = vld [vmem:[%s2827_s0 + $0x598] sm:$0xff] }
  0xb5   :  { %762 = vmatprep.mubr.bf16.mxu1 %v289_v35  ;;  %1076 = vmatmul.mubr.bf16.gmra.mrb[64].mxu0 %v294_v38  ;;  %v319_v35 = vpack.c.bf16 %v195_v33, %v191_v32  ;;  %v181_v38 = vld [vmem:[%s2827_s0 + $0x548] sm:$0xff]  ;;  %v328_v33 = vpack.c.bf16 %v216_v30, %v212_v29 }
  0xb6   :  { %1316 = vmatprep.mubr.msk.bf16.mxu0 %vm498_vm0, %v299_v39  ;;  %v185_v39 = vld [vmem:[%s2827_s0 + $0x568] sm:$0xff] }
  0xb7   :  { %v313_v43 = vpack.c.bf16 %v185_v39, %v181_v38  ;;  %v225_v32 = vld [vmem:[%s2827_s0 + $0x6a8] sm:$0xff]  ;;  %v220_v38 = vld [vmem:[%s2827_s0 + $0x680] sm:$0xff] }
  0xb8   :  { %v224_v39 = vld [vmem:[%s2827_s0 + $0x6a0] sm:$0xff] }
  0xb9   :  { %v332_v41 = vpack.c.bf16 %v224_v39, %v220_v38 }
  0xbc   :  { %763 = vmatmul.mubr.bf16.gmra.mrb[60].mxu1 %v288_v44  ;;  %v199_v44 = vld [vmem:[%s2827_s0 + $0x5d8] sm:$0xff] }
  0xbd   :  { %772 = vmatprep.mubr.bf16.mxu1 %v293_v47  ;;  %1086 = vmatmul.mubr.bf16.gmra.mrb[68].mxu0 %v298_v50  ;;  %v323_v47 = vpack.c.bf16 %v203_v45, %v199_v44  ;;  %v189_v50 = vld [vmem:[%s2827_s0 + $0x588] sm:$0xff] }
  0xbe   :  { %1317 = vmatprep.mubr.msk.bf16.mxu0 %vm498_vm0, %v303_v51  ;;  %v193_v51 = vld [vmem:[%s2827_s0 + $0x5a8] sm:$0xff] }
  0xbf   :  { %v317_v55 = vpack.c.bf16 %v193_v51, %v189_v50 }
  0xc4   :  { %773 = vmatmul.mubr.bf16.gmra.mrb[64].mxu1 %v292_v56  ;;  %v207_v56 = vld [vmem:[%s2827_s0 + $0x618] sm:$0xff] }
  0xc5   :  { %782 = vmatprep.mubr.bf16.mxu1 %v297_v59  ;;  %1096 = vmatmul.mubr.bf16.gmra.mrb[72].mxu0 %v302_v62  ;;  %v327_v59 = vpack.c.bf16 %v211_v57, %v207_v56  ;;  %v197_v62 = vld [vmem:[%s2827_s0 + $0x5c8] sm:$0xff] }
  0xc6   :  { %1318 = vmatprep.mubr.msk.bf16.mxu0 %vm498_vm0, %v307_v63  ;;  %v201_v63 = vld [vmem:[%s2827_s0 + $0x5e8] sm:$0xff] }
  0xc7   :  { %v321_v3 = vpack.c.bf16 %v201_v63, %v197_v62 }
  0xcc   :  { %783 = vmatmul.mubr.bf16.gmra.mrb[68].mxu1 %v296_v4  ;;  %v215_v4 = vld [vmem:[%s2827_s0 + $0x658] sm:$0xff] }
  0xcd   :  { %792 = vmatprep.mubr.bf16.mxu1 %v301_v7  ;;  %1106 = vmatmul.mubr.bf16.gmra.mrb[76].mxu0 %v306_v10  ;;  %v331_v7 = vpack.c.bf16 %v219_v5, %v215_v4  ;;  %v205_v10 = vld [vmem:[%s2827_s0 + $0x608] sm:$0xff] }
  0xce   :  { %1319 = vmatprep.mubr.msk.bf16.mxu0 %vm498_vm0, %v311_v11  ;;  %v209_v11 = vld [vmem:[%s2827_s0 + $0x628] sm:$0xff] }
  0xcf   :  { %v325_v15 = vpack.c.bf16 %v209_v11, %v205_v10 }
  0xd4   :  { %793 = vmatmul.mubr.bf16.gmra.mrb[72].mxu1 %v300_v16  ;;  %v223_v16 = vld [vmem:[%s2827_s0 + $0x698] sm:$0xff] }
  0xd5   :  { %802 = vmatprep.mubr.bf16.mxu1 %v305_v19  ;;  %1116 = vmatmul.mubr.bf16.gmra.mrb[80].mxu0 %v310_v22  ;;  %v335_v19 = vpack.c.bf16 %v227_v17, %v223_v16  ;;  %v213_v22 = vld [vmem:[%s2827_s0 + $0x648] sm:$0xff] }
  0xd6   :  { %1320 = vmatprep.mubr.msk.bf16.mxu0 %vm498_vm0, %v315_v23  ;;  %v217_v23 = vld [vmem:[%s2827_s0 + $0x668] sm:$0xff] }
  0xd7   :  { %v329_v27 = vpack.c.bf16 %v217_v23, %v213_v22 }
  0xdc   :  { %803 = vmatmul.mubr.bf16.gmra.mrb[76].mxu1 %v304_v28  ;;  %v334_v28 = vpack.c.bf16 %v226_v26, %v222_v25 }
  0xdd   :  { %812 = vmatprep.mubr.bf16.mxu1 %v309_v31  ;;  %1126 = vmatmul.mubr.bf16.gmra.mrb[84].mxu0 %v314_v34  ;;  %v221_v31 = vld [vmem:[%s2827_s0 + $0x688] sm:$0xff] }
  0xde   :  { %1321 = vmatprep.mubr.msk.bf16.mxu0 %vm498_vm0, %v319_v35  ;;  %v333_v34 = vpack.c.bf16 %v225_v32, %v221_v31 }
  0xe4   :  { %813 = vmatmul.mubr.bf16.gmra.mrb[80].mxu1 %v308_v40 }
  0xe5   :  { %822 = vmatprep.mubr.bf16.mxu1 %v313_v43  ;;  %1136 = vmatmul.mubr.bf16.gmra.mrb[88].mxu0 %v318_v46 }
  0xe6   :  { %1322 = vmatprep.mubr.msk.bf16.mxu0 %vm498_vm0, %v323_v47 }
  0xec   :  { %823 = vmatmul.mubr.bf16.gmra.mrb[84].mxu1 %v312_v52 }
  0xed   :  { %832 = vmatprep.mubr.bf16.mxu1 %v317_v55  ;;  %1146 = vmatmul.mubr.bf16.gmra.mrb[92].mxu0 %v322_v58 }
  0xee   :  { %1323 = vmatprep.mubr.msk.bf16.mxu0 %vm498_vm0, %v327_v59 }
  0xf4   :  { %833 = vmatmul.mubr.bf16.gmra.mrb[88].mxu1 %v316_v0 }
  0xf5   :  { %842 = vmatprep.mubr.bf16.mxu1 %v321_v3  ;;  %1156 = vmatmul.mubr.bf16.gmra.mrb[96].mxu0 %v326_v6 }
  0xf6   :  { %1324 = vmatprep.mubr.msk.bf16.mxu0 %vm498_vm0, %v331_v7 }
  0xfc   :  { %843 = vmatmul.mubr.bf16.gmra.mrb[92].mxu1 %v320_v12 }
  0xfd   :  { %852 = vmatprep.mubr.bf16.mxu1 %v325_v15  ;;  %1166 = vmatmul.mubr.bf16.gmra.mrb[100].mxu0 %v330_v18 }
  0xfe   :  { %1325 = vmatprep.mubr.msk.bf16.mxu0 %vm498_vm0, %v335_v19 }
 0x104   :  { %853 = vmatmul.mubr.bf16.gmra.mrb[96].mxu1 %v324_v24 }
 0x105   :  { %862 = vmatprep.mubr.bf16.mxu1 %v329_v27  ;;  %1176 = vmatmul.mubr.bf16.gmra.mrb[104].mxu0 %v334_v28 }
 0x108   :  { %v917_v35 = vpop.f32.mrb[0].mxu0 }
 0x109   :  { %v919_v36 = vpop.f32.mrb[1].mxu0 }
 0x10a   :  { %v921_v37 = vpop.f32.mrb[2].mxu0 }
 0x10b   :  { %v923_v40 = vpop.f32.mrb[3].mxu0 }
 0x10c   :  { %863 = vmatmul.mubr.bf16.gmra.mrb[100].mxu1 %v328_v33 }
 0x10d   :  { %872 = vmatprep.mubr.bf16.mxu1 %v333_v34 }
 0x110   :  { %v927_v42 = vpop.f32.mrb[4].mxu0 }
 0x111   :  { %v929_v43 = vpop.f32.mrb[5].mxu0 }
 0x112   :  { %v931_v44 = vpop.f32.mrb[6].mxu0 }
 0x113   :  { %v933_v45 = vpop.f32.mrb[7].mxu0 }
 0x114   :  { %873 = vmatmul.mubr.bf16.gmra.mrb[104].mxu1 %v332_v41 }
 0x117   :  { %v614_v46 = vpop.f32.mrb[0].mxu1 }
 0x118   :  { %v918_v47 = vadd.f32 %v917_v35, %v614_v46  ;;  %v616_v48 = vpop.f32.mrb[1].mxu1  ;;  %v937_v53 = vpop.f32.mrb[8].mxu0 }
 0x119   :  { %v920_v49 = vadd.f32 %v919_v36, %v616_v48  ;;  %v618_v50 = vpop.f32.mrb[2].mxu1  ;;  %v939_v55 = vpop.f32.mrb[9].mxu0 }
 0x11a   :  { %1186 = vst [vmem:[%s2828_s2] sm:$0xff] %v918_v47  ;;  %v922_v51 = vadd.f32 %v921_v37, %v618_v50  ;;  %v620_v52 = vpop.f32.mrb[3].mxu1  ;;  %v941_v56 = vpop.f32.mrb[10].mxu0 }
 0x11b   :  { %1188 = vst.msk [vmem:[%s2828_s2 + $0x8] sm:$0xff] %vm1187_vm1, %v920_v49  ;;  %v924_v54 = vadd.f32 %v923_v40, %v620_v52  ;;  %v943_v57 = vpop.f32.mrb[11].mxu0 }
 0x11c   :  { %1189 = vst [vmem:[%s2828_s2 + $0x10] sm:$0xff] %v922_v51 }
 0x11d   :  { %1190 = vst.msk [vmem:[%s2828_s2 + $0x18] sm:$0xff] %vm1187_vm1, %v924_v54 }
 0x11f   :  { %v624_v58 = vpop.f32.mrb[4].mxu1 }
 0x120   :  { %v928_v59 = vadd.f32 %v927_v42, %v624_v58  ;;  %v626_v60 = vpop.f32.mrb[5].mxu1  ;;  %v947_v1 = vpop.f32.mrb[12].mxu0 }
 0x121   :  { %v930_v61 = vadd.f32 %v929_v43, %v626_v60  ;;  %v628_v62 = vpop.f32.mrb[6].mxu1  ;;  %v949_v3 = vpop.f32.mrb[13].mxu0 }
 0x122   :  { %1191 = vst [vmem:[%s2828_s2 + $0x20] sm:$0xff] %v928_v59  ;;  %v932_v63 = vadd.f32 %v931_v44, %v628_v62  ;;  %v630_v0 = vpop.f32.mrb[7].mxu1  ;;  %v951_v4 = vpop.f32.mrb[14].mxu0 }
 0x123   :  { %1192 = vst.msk [vmem:[%s2828_s2 + $0x28] sm:$0xff] %vm1187_vm1, %v930_v61  ;;  %v934_v2 = vadd.f32 %v933_v45, %v630_v0  ;;  %v953_v5 = vpop.f32.mrb[15].mxu0 }
 0x124   :  { %1193 = vst [vmem:[%s2828_s2 + $0x30] sm:$0xff] %v932_v63 }
 0x125   :  { %1194 = vst.msk [vmem:[%s2828_s2 + $0x38] sm:$0xff] %vm1187_vm1, %v934_v2 }
 0x127   :  { %v634_v6 = vpop.f32.mrb[8].mxu1 }
 0x128   :  { %v938_v7 = vadd.f32 %v937_v53, %v634_v6  ;;  %v636_v8 = vpop.f32.mrb[9].mxu1  ;;  %v957_v13 = vpop.f32.mrb[16].mxu0 }
 0x129   :  { %v940_v9 = vadd.f32 %v939_v55, %v636_v8  ;;  %v638_v10 = vpop.f32.mrb[10].mxu1  ;;  %v959_v15 = vpop.f32.mrb[17].mxu0 }
 0x12a   :  { %1195 = vst [vmem:[%s2828_s2 + $0x40] sm:$0xff] %v938_v7  ;;  %v942_v11 = vadd.f32 %v941_v56, %v638_v10  ;;  %v640_v12 = vpop.f32.mrb[11].mxu1  ;;  %v961_v16 = vpop.f32.mrb[18].mxu0 }
 0x12b   :  { %1196 = vst.msk [vmem:[%s2828_s2 + $0x48] sm:$0xff] %vm1187_vm1, %v940_v9  ;;  %v944_v14 = vadd.f32 %v943_v57, %v640_v12  ;;  %v963_v17 = vpop.f32.mrb[19].mxu0 }
 0x12c   :  { %1197 = vst [vmem:[%s2828_s2 + $0x50] sm:$0xff] %v942_v11 }
 0x12d   :  { %1198 = vst.msk [vmem:[%s2828_s2 + $0x58] sm:$0xff] %vm1187_vm1, %v944_v14 }
 0x12f   :  { %v644_v18 = vpop.f32.mrb[12].mxu1 }
 0x130   :  { %v948_v19 = vadd.f32 %v947_v1, %v644_v18  ;;  %v646_v20 = vpop.f32.mrb[13].mxu1  ;;  %v967_v25 = vpop.f32.mrb[20].mxu0 }
 0x131   :  { %v950_v21 = vadd.f32 %v949_v3, %v646_v20  ;;  %v648_v22 = vpop.f32.mrb[14].mxu1  ;;  %v969_v27 = vpop.f32.mrb[21].mxu0 }
 0x132   :  { %1199 = vst [vmem:[%s2828_s2 + $0x60] sm:$0xff] %v948_v19  ;;  %v952_v23 = vadd.f32 %v951_v4, %v648_v22  ;;  %v650_v24 = vpop.f32.mrb[15].mxu1  ;;  %v971_v28 = vpop.f32.mrb[22].mxu0 }
 0x133   :  { %1200 = vst.msk [vmem:[%s2828_s2 + $0x68] sm:$0xff] %vm1187_vm1, %v950_v21  ;;  %v954_v26 = vadd.f32 %v953_v5, %v650_v24  ;;  %v973_v29 = vpop.f32.mrb[23].mxu0 }
 0x134   :  { %1201 = vst [vmem:[%s2828_s2 + $0x70] sm:$0xff] %v952_v23 }
 0x135   :  { %1202 = vst.msk [vmem:[%s2828_s2 + $0x78] sm:$0xff] %vm1187_vm1, %v954_v26 }
 0x137   :  { %v654_v30 = vpop.f32.mrb[16].mxu1 }
 0x138   :  { %v958_v31 = vadd.f32 %v957_v13, %v654_v30  ;;  %v656_v32 = vpop.f32.mrb[17].mxu1  ;;  %v977_v37 = vpop.f32.mrb[24].mxu0 }
 0x139   :  { %v960_v33 = vadd.f32 %v959_v15, %v656_v32  ;;  %v658_v34 = vpop.f32.mrb[18].mxu1  ;;  %v979_v39 = vpop.f32.mrb[25].mxu0 }
 0x13a   :  { %1203 = vst [vmem:[%s2828_s2 + $0x80] sm:$0xff] %v958_v31  ;;  %v962_v35 = vadd.f32 %v961_v16, %v658_v34  ;;  %v660_v36 = vpop.f32.mrb[19].mxu1  ;;  %v981_v40 = vpop.f32.mrb[26].mxu0 }
 0x13b   :  { %1204 = vst.msk [vmem:[%s2828_s2 + $0x88] sm:$0xff] %vm1187_vm1, %v960_v33  ;;  %v964_v38 = vadd.f32 %v963_v17, %v660_v36  ;;  %v983_v41 = vpop.f32.mrb[27].mxu0 }
 0x13c   :  { %1205 = vst [vmem:[%s2828_s2 + $0x90] sm:$0xff] %v962_v35 }
 0x13d   :  { %1206 = vst.msk [vmem:[%s2828_s2 + $0x98] sm:$0xff] %vm1187_vm1, %v964_v38 }
 0x13f   :  { %v664_v42 = vpop.f32.mrb[20].mxu1 }
 0x140   :  { %v968_v43 = vadd.f32 %v967_v25, %v664_v42  ;;  %v666_v44 = vpop.f32.mrb[21].mxu1  ;;  %v987_v49 = vpop.f32.mrb[28].mxu0 }
 0x141   :  { %v970_v45 = vadd.f32 %v969_v27, %v666_v44  ;;  %v668_v46 = vpop.f32.mrb[22].mxu1  ;;  %v989_v51 = vpop.f32.mrb[29].mxu0 }
 0x142   :  { %1207 = vst [vmem:[%s2828_s2 + $0xa0] sm:$0xff] %v968_v43  ;;  %v972_v47 = vadd.f32 %v971_v28, %v668_v46  ;;  %v670_v48 = vpop.f32.mrb[23].mxu1  ;;  %v991_v52 = vpop.f32.mrb[30].mxu0 }
 0x143   :  { %1208 = vst.msk [vmem:[%s2828_s2 + $0xa8] sm:$0xff] %vm1187_vm1, %v970_v45  ;;  %v974_v50 = vadd.f32 %v973_v29, %v670_v48  ;;  %v993_v53 = vpop.f32.mrb[31].mxu0 }
 0x144   :  { %1209 = vst [vmem:[%s2828_s2 + $0xb0] sm:$0xff] %v972_v47 }
 0x145   :  { %1210 = vst.msk [vmem:[%s2828_s2 + $0xb8] sm:$0xff] %vm1187_vm1, %v974_v50 }
 0x147   :  { %v674_v54 = vpop.f32.mrb[24].mxu1 }
 0x148   :  { %v978_v55 = vadd.f32 %v977_v37, %v674_v54  ;;  %v676_v56 = vpop.f32.mrb[25].mxu1  ;;  %v997_v61 = vpop.f32.mrb[32].mxu0 }
 0x149   :  { %v980_v57 = vadd.f32 %v979_v39, %v676_v56  ;;  %v678_v58 = vpop.f32.mrb[26].mxu1  ;;  %v999_v63 = vpop.f32.mrb[33].mxu0 }
 0x14a   :  { %1211 = vst [vmem:[%s2828_s2 + $0xc0] sm:$0xff] %v978_v55  ;;  %v982_v59 = vadd.f32 %v981_v40, %v678_v58  ;;  %v680_v60 = vpop.f32.mrb[27].mxu1  ;;  %v1001_v0 = vpop.f32.mrb[34].mxu0 }
 0x14b   :  { %1212 = vst.msk [vmem:[%s2828_s2 + $0xc8] sm:$0xff] %vm1187_vm1, %v980_v57  ;;  %v984_v62 = vadd.f32 %v983_v41, %v680_v60  ;;  %v1003_v1 = vpop.f32.mrb[35].mxu0 }
 0x14c   :  { %1213 = vst [vmem:[%s2828_s2 + $0xd0] sm:$0xff] %v982_v59 }
 0x14d   :  { %1214 = vst.msk [vmem:[%s2828_s2 + $0xd8] sm:$0xff] %vm1187_vm1, %v984_v62 }
 0x14f   :  { %v684_v2 = vpop.f32.mrb[28].mxu1 }
 0x150   :  { %v988_v3 = vadd.f32 %v987_v49, %v684_v2  ;;  %v686_v4 = vpop.f32.mrb[29].mxu1  ;;  %v1007_v9 = vpop.f32.mrb[36].mxu0 }
 0x151   :  { %v990_v5 = vadd.f32 %v989_v51, %v686_v4  ;;  %v688_v6 = vpop.f32.mrb[30].mxu1  ;;  %v1009_v11 = vpop.f32.mrb[37].mxu0 }
 0x152   :  { %1215 = vst [vmem:[%s2828_s2 + $0xe0] sm:$0xff] %v988_v3  ;;  %v992_v7 = vadd.f32 %v991_v52, %v688_v6  ;;  %v690_v8 = vpop.f32.mrb[31].mxu1  ;;  %v1011_v12 = vpop.f32.mrb[38].mxu0 }
 0x153   :  { %1216 = vst.msk [vmem:[%s2828_s2 + $0xe8] sm:$0xff] %vm1187_vm1, %v990_v5  ;;  %v994_v10 = vadd.f32 %v993_v53, %v690_v8  ;;  %v1013_v13 = vpop.f32.mrb[39].mxu0 }
 0x154   :  { %1217 = vst [vmem:[%s2828_s2 + $0xf0] sm:$0xff] %v992_v7 }
 0x155   :  { %1218 = vst.msk [vmem:[%s2828_s2 + $0xf8] sm:$0xff] %vm1187_vm1, %v994_v10 }
 0x157   :  { %v694_v14 = vpop.f32.mrb[32].mxu1 }
 0x158   :  { %v998_v15 = vadd.f32 %v997_v61, %v694_v14  ;;  %v696_v16 = vpop.f32.mrb[33].mxu1  ;;  %v1017_v21 = vpop.f32.mrb[40].mxu0 }
 0x159   :  { %v1000_v17 = vadd.f32 %v999_v63, %v696_v16  ;;  %v698_v18 = vpop.f32.mrb[34].mxu1  ;;  %v1019_v23 = vpop.f32.mrb[41].mxu0 }
 0x15a   :  { %1219 = vst [vmem:[%s2828_s2 + $0x100] sm:$0xff] %v998_v15  ;;  %v1002_v19 = vadd.f32 %v1001_v0, %v698_v18  ;;  %v700_v20 = vpop.f32.mrb[35].mxu1  ;;  %v1021_v24 = vpop.f32.mrb[42].mxu0 }
 0x15b   :  { %1220 = vst.msk [vmem:[%s2828_s2 + $0x108] sm:$0xff] %vm1187_vm1, %v1000_v17  ;;  %v1004_v22 = vadd.f32 %v1003_v1, %v700_v20  ;;  %v1023_v25 = vpop.f32.mrb[43].mxu0 }
 0x15c   :  { %1221 = vst [vmem:[%s2828_s2 + $0x110] sm:$0xff] %v1002_v19 }
 0x15d   :  { %1222 = vst.msk [vmem:[%s2828_s2 + $0x118] sm:$0xff] %vm1187_vm1, %v1004_v22 }
 0x15f   :  { %v704_v26 = vpop.f32.mrb[36].mxu1 }
 0x160   :  { %v1008_v27 = vadd.f32 %v1007_v9, %v704_v26  ;;  %v706_v28 = vpop.f32.mrb[37].mxu1  ;;  %v1027_v33 = vpop.f32.mrb[44].mxu0 }
 0x161   :  { %v1010_v29 = vadd.f32 %v1009_v11, %v706_v28  ;;  %v708_v30 = vpop.f32.mrb[38].mxu1  ;;  %v1029_v35 = vpop.f32.mrb[45].mxu0 }
 0x162   :  { %1223 = vst [vmem:[%s2828_s2 + $0x120] sm:$0xff] %v1008_v27  ;;  %v1012_v31 = vadd.f32 %v1011_v12, %v708_v30  ;;  %v710_v32 = vpop.f32.mrb[39].mxu1  ;;  %v1031_v36 = vpop.f32.mrb[46].mxu0 }
 0x163   :  { %1224 = vst.msk [vmem:[%s2828_s2 + $0x128] sm:$0xff] %vm1187_vm1, %v1010_v29  ;;  %v1014_v34 = vadd.f32 %v1013_v13, %v710_v32  ;;  %v1033_v37 = vpop.f32.mrb[47].mxu0 }
 0x164   :  { %1225 = vst [vmem:[%s2828_s2 + $0x130] sm:$0xff] %v1012_v31 }
 0x165   :  { %1226 = vst.msk [vmem:[%s2828_s2 + $0x138] sm:$0xff] %vm1187_vm1, %v1014_v34 }
 0x167   :  { %v714_v38 = vpop.f32.mrb[40].mxu1 }
 0x168   :  { %v1018_v39 = vadd.f32 %v1017_v21, %v714_v38  ;;  %v716_v40 = vpop.f32.mrb[41].mxu1  ;;  %v1037_v45 = vpop.f32.mrb[48].mxu0 }
 0x169   :  { %v1020_v41 = vadd.f32 %v1019_v23, %v716_v40  ;;  %v718_v42 = vpop.f32.mrb[42].mxu1  ;;  %v1039_v47 = vpop.f32.mrb[49].mxu0 }
 0x16a   :  { %1227 = vst [vmem:[%s2828_s2 + $0x140] sm:$0xff] %v1018_v39  ;;  %v1022_v43 = vadd.f32 %v1021_v24, %v718_v42  ;;  %v720_v44 = vpop.f32.mrb[43].mxu1  ;;  %v1041_v48 = vpop.f32.mrb[50].mxu0 }
 0x16b   :  { %1228 = vst.msk [vmem:[%s2828_s2 + $0x148] sm:$0xff] %vm1187_vm1, %v1020_v41  ;;  %v1024_v46 = vadd.f32 %v1023_v25, %v720_v44  ;;  %v1043_v49 = vpop.f32.mrb[51].mxu0 }
 0x16c   :  { %1229 = vst [vmem:[%s2828_s2 + $0x150] sm:$0xff] %v1022_v43 }
 0x16d   :  { %1230 = vst.msk [vmem:[%s2828_s2 + $0x158] sm:$0xff] %vm1187_vm1, %v1024_v46 }
 0x16f   :  { %v724_v50 = vpop.f32.mrb[44].mxu1 }
 0x170   :  { %v1028_v51 = vadd.f32 %v1027_v33, %v724_v50  ;;  %v726_v52 = vpop.f32.mrb[45].mxu1  ;;  %v1047_v57 = vpop.f32.mrb[52].mxu0 }
 0x171   :  { %v1030_v53 = vadd.f32 %v1029_v35, %v726_v52  ;;  %v728_v54 = vpop.f32.mrb[46].mxu1  ;;  %v1049_v59 = vpop.f32.mrb[53].mxu0 }
 0x172   :  { %1231 = vst [vmem:[%s2828_s2 + $0x160] sm:$0xff] %v1028_v51  ;;  %v1032_v55 = vadd.f32 %v1031_v36, %v728_v54  ;;  %v730_v56 = vpop.f32.mrb[47].mxu1  ;;  %v1051_v60 = vpop.f32.mrb[54].mxu0 }
 0x173   :  { %1232 = vst.msk [vmem:[%s2828_s2 + $0x168] sm:$0xff] %vm1187_vm1, %v1030_v53  ;;  %v1034_v58 = vadd.f32 %v1033_v37, %v730_v56  ;;  %v1053_v61 = vpop.f32.mrb[55].mxu0 }
 0x174   :  { %1233 = vst [vmem:[%s2828_s2 + $0x170] sm:$0xff] %v1032_v55 }
 0x175   :  { %1234 = vst.msk [vmem:[%s2828_s2 + $0x178] sm:$0xff] %vm1187_vm1, %v1034_v58 }
 0x177   :  { %v734_v62 = vpop.f32.mrb[48].mxu1 }
 0x178   :  { %v1038_v63 = vadd.f32 %v1037_v45, %v734_v62  ;;  %v736_v0 = vpop.f32.mrb[49].mxu1  ;;  %v1057_v5 = vpop.f32.mrb[56].mxu0 }
 0x179   :  { %v1040_v1 = vadd.f32 %v1039_v47, %v736_v0  ;;  %v738_v2 = vpop.f32.mrb[50].mxu1  ;;  %v1059_v7 = vpop.f32.mrb[57].mxu0 }
 0x17a   :  { %1235 = vst [vmem:[%s2828_s2 + $0x180] sm:$0xff] %v1038_v63  ;;  %v1042_v3 = vadd.f32 %v1041_v48, %v738_v2  ;;  %v740_v4 = vpop.f32.mrb[51].mxu1  ;;  %v1061_v8 = vpop.f32.mrb[58].mxu0 }
 0x17b   :  { %1236 = vst.msk [vmem:[%s2828_s2 + $0x188] sm:$0xff] %vm1187_vm1, %v1040_v1  ;;  %v1044_v6 = vadd.f32 %v1043_v49, %v740_v4  ;;  %v1063_v9 = vpop.f32.mrb[59].mxu0 }
 0x17c   :  { %1237 = vst [vmem:[%s2828_s2 + $0x190] sm:$0xff] %v1042_v3 }
 0x17d   :  { %1238 = vst.msk [vmem:[%s2828_s2 + $0x198] sm:$0xff] %vm1187_vm1, %v1044_v6 }
 0x17f   :  { %v744_v10 = vpop.f32.mrb[52].mxu1 }
 0x180   :  { %v1048_v11 = vadd.f32 %v1047_v57, %v744_v10  ;;  %v746_v12 = vpop.f32.mrb[53].mxu1  ;;  %v1067_v17 = vpop.f32.mrb[60].mxu0 }
 0x181   :  { %v1050_v13 = vadd.f32 %v1049_v59, %v746_v12  ;;  %v748_v14 = vpop.f32.mrb[54].mxu1  ;;  %v1069_v19 = vpop.f32.mrb[61].mxu0 }
 0x182   :  { %1239 = vst [vmem:[%s2828_s2 + $0x1a0] sm:$0xff] %v1048_v11  ;;  %v1052_v15 = vadd.f32 %v1051_v60, %v748_v14  ;;  %v750_v16 = vpop.f32.mrb[55].mxu1  ;;  %v1071_v20 = vpop.f32.mrb[62].mxu0 }
 0x183   :  { %1240 = vst.msk [vmem:[%s2828_s2 + $0x1a8] sm:$0xff] %vm1187_vm1, %v1050_v13  ;;  %v1054_v18 = vadd.f32 %v1053_v61, %v750_v16  ;;  %v1073_v21 = vpop.f32.mrb[63].mxu0 }
 0x184   :  { %1241 = vst [vmem:[%s2828_s2 + $0x1b0] sm:$0xff] %v1052_v15 }
 0x185   :  { %1242 = vst.msk [vmem:[%s2828_s2 + $0x1b8] sm:$0xff] %vm1187_vm1, %v1054_v18 }
 0x187   :  { %v754_v22 = vpop.f32.mrb[56].mxu1 }
 0x188   :  { %v1058_v23 = vadd.f32 %v1057_v5, %v754_v22  ;;  %v756_v24 = vpop.f32.mrb[57].mxu1  ;;  %v1077_v29 = vpop.f32.mrb[64].mxu0 }
 0x189   :  { %v1060_v25 = vadd.f32 %v1059_v7, %v756_v24  ;;  %v758_v26 = vpop.f32.mrb[58].mxu1  ;;  %v1079_v31 = vpop.f32.mrb[65].mxu0 }
 0x18a   :  { %1243 = vst [vmem:[%s2828_s2 + $0x1c0] sm:$0xff] %v1058_v23  ;;  %v1062_v27 = vadd.f32 %v1061_v8, %v758_v26  ;;  %v760_v28 = vpop.f32.mrb[59].mxu1  ;;  %v1081_v32 = vpop.f32.mrb[66].mxu0 }
 0x18b   :  { %1244 = vst.msk [vmem:[%s2828_s2 + $0x1c8] sm:$0xff] %vm1187_vm1, %v1060_v25  ;;  %v1064_v30 = vadd.f32 %v1063_v9, %v760_v28  ;;  %v1083_v33 = vpop.f32.mrb[67].mxu0 }
 0x18c   :  { %1245 = vst [vmem:[%s2828_s2 + $0x1d0] sm:$0xff] %v1062_v27 }
 0x18d   :  { %1246 = vst.msk [vmem:[%s2828_s2 + $0x1d8] sm:$0xff] %vm1187_vm1, %v1064_v30 }
 0x18f   :  { %v764_v34 = vpop.f32.mrb[60].mxu1 }
 0x190   :  { %v1068_v35 = vadd.f32 %v1067_v17, %v764_v34  ;;  %v766_v36 = vpop.f32.mrb[61].mxu1  ;;  %v1087_v41 = vpop.f32.mrb[68].mxu0 }
 0x191   :  { %v1070_v37 = vadd.f32 %v1069_v19, %v766_v36  ;;  %v768_v38 = vpop.f32.mrb[62].mxu1  ;;  %v1089_v43 = vpop.f32.mrb[69].mxu0 }
 0x192   :  { %1247 = vst [vmem:[%s2828_s2 + $0x1e0] sm:$0xff] %v1068_v35  ;;  %v1072_v39 = vadd.f32 %v1071_v20, %v768_v38  ;;  %v770_v40 = vpop.f32.mrb[63].mxu1  ;;  %v1091_v44 = vpop.f32.mrb[70].mxu0 }
 0x193   :  { %1248 = vst.msk [vmem:[%s2828_s2 + $0x1e8] sm:$0xff] %vm1187_vm1, %v1070_v37  ;;  %v1074_v42 = vadd.f32 %v1073_v21, %v770_v40  ;;  %v1093_v45 = vpop.f32.mrb[71].mxu0 }
 0x194   :  { %1249 = vst [vmem:[%s2828_s2 + $0x1f0] sm:$0xff] %v1072_v39 }
 0x195   :  { %1250 = vst.msk [vmem:[%s2828_s2 + $0x1f8] sm:$0xff] %vm1187_vm1, %v1074_v42 }
 0x197   :  { %v774_v46 = vpop.f32.mrb[64].mxu1 }
 0x198   :  { %v1078_v47 = vadd.f32 %v1077_v29, %v774_v46  ;;  %v776_v48 = vpop.f32.mrb[65].mxu1  ;;  %v1097_v53 = vpop.f32.mrb[72].mxu0 }
 0x199   :  { %v1080_v49 = vadd.f32 %v1079_v31, %v776_v48  ;;  %v778_v50 = vpop.f32.mrb[66].mxu1  ;;  %v1099_v55 = vpop.f32.mrb[73].mxu0 }
 0x19a   :  { %1251 = vst [vmem:[%s2828_s2 + $0x200] sm:$0xff] %v1078_v47  ;;  %v1082_v51 = vadd.f32 %v1081_v32, %v778_v50  ;;  %v780_v52 = vpop.f32.mrb[67].mxu1  ;;  %v1101_v56 = vpop.f32.mrb[74].mxu0 }
 0x19b   :  { %1252 = vst.msk [vmem:[%s2828_s2 + $0x208] sm:$0xff] %vm1187_vm1, %v1080_v49  ;;  %v1084_v54 = vadd.f32 %v1083_v33, %v780_v52  ;;  %v1103_v57 = vpop.f32.mrb[75].mxu0 }
 0x19c   :  { %1253 = vst [vmem:[%s2828_s2 + $0x210] sm:$0xff] %v1082_v51 }
 0x19d   :  { %1254 = vst.msk [vmem:[%s2828_s2 + $0x218] sm:$0xff] %vm1187_vm1, %v1084_v54 }
 0x19f   :  { %v784_v58 = vpop.f32.mrb[68].mxu1 }
 0x1a0   :  { %v1088_v59 = vadd.f32 %v1087_v41, %v784_v58  ;;  %v786_v60 = vpop.f32.mrb[69].mxu1  ;;  %v1107_v1 = vpop.f32.mrb[76].mxu0 }
 0x1a1   :  { %v1090_v61 = vadd.f32 %v1089_v43, %v786_v60  ;;  %v788_v62 = vpop.f32.mrb[70].mxu1  ;;  %v1109_v3 = vpop.f32.mrb[77].mxu0 }
 0x1a2   :  { %1255 = vst [vmem:[%s2828_s2 + $0x220] sm:$0xff] %v1088_v59  ;;  %v1092_v63 = vadd.f32 %v1091_v44, %v788_v62  ;;  %v790_v0 = vpop.f32.mrb[71].mxu1  ;;  %v1111_v4 = vpop.f32.mrb[78].mxu0 }
 0x1a3   :  { %1256 = vst.msk [vmem:[%s2828_s2 + $0x228] sm:$0xff] %vm1187_vm1, %v1090_v61  ;;  %v1094_v2 = vadd.f32 %v1093_v45, %v790_v0  ;;  %v1113_v5 = vpop.f32.mrb[79].mxu0 }
 0x1a4   :  { %1257 = vst [vmem:[%s2828_s2 + $0x230] sm:$0xff] %v1092_v63 }
 0x1a5   :  { %1258 = vst.msk [vmem:[%s2828_s2 + $0x238] sm:$0xff] %vm1187_vm1, %v1094_v2 }
 0x1a7   :  { %v794_v6 = vpop.f32.mrb[72].mxu1 }
 0x1a8   :  { %v1098_v7 = vadd.f32 %v1097_v53, %v794_v6  ;;  %v796_v8 = vpop.f32.mrb[73].mxu1  ;;  %v1117_v13 = vpop.f32.mrb[80].mxu0 }
 0x1a9   :  { %v1100_v9 = vadd.f32 %v1099_v55, %v796_v8  ;;  %v798_v10 = vpop.f32.mrb[74].mxu1  ;;  %v1119_v15 = vpop.f32.mrb[81].mxu0 }
 0x1aa   :  { %1259 = vst [vmem:[%s2828_s2 + $0x240] sm:$0xff] %v1098_v7  ;;  %v1102_v11 = vadd.f32 %v1101_v56, %v798_v10  ;;  %v800_v12 = vpop.f32.mrb[75].mxu1  ;;  %v1121_v16 = vpop.f32.mrb[82].mxu0 }
 0x1ab   :  { %1260 = vst.msk [vmem:[%s2828_s2 + $0x248] sm:$0xff] %vm1187_vm1, %v1100_v9  ;;  %v1104_v14 = vadd.f32 %v1103_v57, %v800_v12  ;;  %v1123_v17 = vpop.f32.mrb[83].mxu0 }
 0x1ac   :  { %1261 = vst [vmem:[%s2828_s2 + $0x250] sm:$0xff] %v1102_v11 }
 0x1ad   :  { %1262 = vst.msk [vmem:[%s2828_s2 + $0x258] sm:$0xff] %vm1187_vm1, %v1104_v14 }
 0x1af   :  { %v804_v18 = vpop.f32.mrb[76].mxu1 }
 0x1b0   :  { %v1108_v19 = vadd.f32 %v1107_v1, %v804_v18  ;;  %v806_v20 = vpop.f32.mrb[77].mxu1  ;;  %v1127_v25 = vpop.f32.mrb[84].mxu0 }
 0x1b1   :  { %v1110_v21 = vadd.f32 %v1109_v3, %v806_v20  ;;  %v808_v22 = vpop.f32.mrb[78].mxu1  ;;  %v1129_v27 = vpop.f32.mrb[85].mxu0 }
 0x1b2   :  { %1263 = vst [vmem:[%s2828_s2 + $0x260] sm:$0xff] %v1108_v19  ;;  %v1112_v23 = vadd.f32 %v1111_v4, %v808_v22  ;;  %v810_v24 = vpop.f32.mrb[79].mxu1  ;;  %v1131_v28 = vpop.f32.mrb[86].mxu0 }
 0x1b3   :  { %1264 = vst.msk [vmem:[%s2828_s2 + $0x268] sm:$0xff] %vm1187_vm1, %v1110_v21  ;;  %v1114_v26 = vadd.f32 %v1113_v5, %v810_v24  ;;  %v1133_v29 = vpop.f32.mrb[87].mxu0 }
 0x1b4   :  { %1265 = vst [vmem:[%s2828_s2 + $0x270] sm:$0xff] %v1112_v23 }
 0x1b5   :  { %1266 = vst.msk [vmem:[%s2828_s2 + $0x278] sm:$0xff] %vm1187_vm1, %v1114_v26 }
 0x1b7   :  { %v814_v30 = vpop.f32.mrb[80].mxu1 }
 0x1b8   :  { %v1118_v31 = vadd.f32 %v1117_v13, %v814_v30  ;;  %v816_v32 = vpop.f32.mrb[81].mxu1  ;;  %v1137_v37 = vpop.f32.mrb[88].mxu0 }
 0x1b9   :  { %v1120_v33 = vadd.f32 %v1119_v15, %v816_v32  ;;  %v818_v34 = vpop.f32.mrb[82].mxu1  ;;  %v1139_v39 = vpop.f32.mrb[89].mxu0 }
 0x1ba   :  { %1267 = vst [vmem:[%s2828_s2 + $0x280] sm:$0xff] %v1118_v31  ;;  %v1122_v35 = vadd.f32 %v1121_v16, %v818_v34  ;;  %v820_v36 = vpop.f32.mrb[83].mxu1  ;;  %v1141_v40 = vpop.f32.mrb[90].mxu0 }
 0x1bb   :  { %1268 = vst.msk [vmem:[%s2828_s2 + $0x288] sm:$0xff] %vm1187_vm1, %v1120_v33  ;;  %v1124_v38 = vadd.f32 %v1123_v17, %v820_v36  ;;  %v1143_v41 = vpop.f32.mrb[91].mxu0 }
 0x1bc   :  { %1269 = vst [vmem:[%s2828_s2 + $0x290] sm:$0xff] %v1122_v35 }
 0x1bd   :  { %1270 = vst.msk [vmem:[%s2828_s2 + $0x298] sm:$0xff] %vm1187_vm1, %v1124_v38 }
 0x1bf   :  { %v824_v42 = vpop.f32.mrb[84].mxu1 }
 0x1c0   :  { %v1128_v43 = vadd.f32 %v1127_v25, %v824_v42  ;;  %v826_v44 = vpop.f32.mrb[85].mxu1  ;;  %v1147_v49 = vpop.f32.mrb[92].mxu0 }
 0x1c1   :  { %v1130_v45 = vadd.f32 %v1129_v27, %v826_v44  ;;  %v828_v46 = vpop.f32.mrb[86].mxu1  ;;  %v1149_v51 = vpop.f32.mrb[93].mxu0 }
 0x1c2   :  { %1271 = vst [vmem:[%s2828_s2 + $0x2a0] sm:$0xff] %v1128_v43  ;;  %v1132_v47 = vadd.f32 %v1131_v28, %v828_v46  ;;  %v830_v48 = vpop.f32.mrb[87].mxu1  ;;  %v1151_v52 = vpop.f32.mrb[94].mxu0 }
 0x1c3   :  { %1272 = vst.msk [vmem:[%s2828_s2 + $0x2a8] sm:$0xff] %vm1187_vm1, %v1130_v45  ;;  %v1134_v50 = vadd.f32 %v1133_v29, %v830_v48  ;;  %v1153_v53 = vpop.f32.mrb[95].mxu0 }
 0x1c4   :  { %1273 = vst [vmem:[%s2828_s2 + $0x2b0] sm:$0xff] %v1132_v47 }
 0x1c5   :  { %1274 = vst.msk [vmem:[%s2828_s2 + $0x2b8] sm:$0xff] %vm1187_vm1, %v1134_v50 }
 0x1c7   :  { %v834_v54 = vpop.f32.mrb[88].mxu1 }
 0x1c8   :  { %v1138_v55 = vadd.f32 %v1137_v37, %v834_v54  ;;  %v836_v56 = vpop.f32.mrb[89].mxu1  ;;  %v1157_v61 = vpop.f32.mrb[96].mxu0 }
 0x1c9   :  { %v1140_v57 = vadd.f32 %v1139_v39, %v836_v56  ;;  %v838_v58 = vpop.f32.mrb[90].mxu1  ;;  %v1159_v63 = vpop.f32.mrb[97].mxu0 }
 0x1ca   :  { %1275 = vst [vmem:[%s2828_s2 + $0x2c0] sm:$0xff] %v1138_v55  ;;  %v1142_v59 = vadd.f32 %v1141_v40, %v838_v58  ;;  %v840_v60 = vpop.f32.mrb[91].mxu1  ;;  %v1161_v0 = vpop.f32.mrb[98].mxu0 }
 0x1cb   :  { %1276 = vst.msk [vmem:[%s2828_s2 + $0x2c8] sm:$0xff] %vm1187_vm1, %v1140_v57  ;;  %v1144_v62 = vadd.f32 %v1143_v41, %v840_v60  ;;  %v1163_v1 = vpop.f32.mrb[99].mxu0 }
 0x1cc   :  { %1277 = vst [vmem:[%s2828_s2 + $0x2d0] sm:$0xff] %v1142_v59 }
 0x1cd   :  { %1278 = vst.msk [vmem:[%s2828_s2 + $0x2d8] sm:$0xff] %vm1187_vm1, %v1144_v62 }
 0x1cf   :  { %v844_v2 = vpop.f32.mrb[92].mxu1 }
 0x1d0   :  { %v1148_v3 = vadd.f32 %v1147_v49, %v844_v2  ;;  %v846_v4 = vpop.f32.mrb[93].mxu1  ;;  %v1167_v9 = vpop.f32.mrb[100].mxu0 }
 0x1d1   :  { %v1150_v5 = vadd.f32 %v1149_v51, %v846_v4  ;;  %v848_v6 = vpop.f32.mrb[94].mxu1  ;;  %v1169_v11 = vpop.f32.mrb[101].mxu0 }
 0x1d2   :  { %1279 = vst [vmem:[%s2828_s2 + $0x2e0] sm:$0xff] %v1148_v3  ;;  %v1152_v7 = vadd.f32 %v1151_v52, %v848_v6  ;;  %v850_v8 = vpop.f32.mrb[95].mxu1  ;;  %v1171_v12 = vpop.f32.mrb[102].mxu0 }
 0x1d3   :  { %1280 = vst.msk [vmem:[%s2828_s2 + $0x2e8] sm:$0xff] %vm1187_vm1, %v1150_v5  ;;  %v1154_v10 = vadd.f32 %v1153_v53, %v850_v8  ;;  %v1173_v13 = vpop.f32.mrb[103].mxu0 }
 0x1d4   :  { %1281 = vst [vmem:[%s2828_s2 + $0x2f0] sm:$0xff] %v1152_v7 }
 0x1d5   :  { %1282 = vst.msk [vmem:[%s2828_s2 + $0x2f8] sm:$0xff] %vm1187_vm1, %v1154_v10 }
 0x1d7   :  { %v854_v14 = vpop.f32.mrb[96].mxu1 }
 0x1d8   :  { %v1158_v15 = vadd.f32 %v1157_v61, %v854_v14  ;;  %v856_v16 = vpop.f32.mrb[97].mxu1  ;;  %v1177_v21 = vpop.f32.mrb[104].mxu0 }
 0x1d9   :  { %v1160_v17 = vadd.f32 %v1159_v63, %v856_v16  ;;  %v858_v18 = vpop.f32.mrb[98].mxu1  ;;  %v1179_v23 = vpop.f32.mrb[105].mxu0 }
 0x1da   :  { %1283 = vst [vmem:[%s2828_s2 + $0x300] sm:$0xff] %v1158_v15  ;;  %v1162_v19 = vadd.f32 %v1161_v0, %v858_v18  ;;  %v860_v20 = vpop.f32.mrb[99].mxu1  ;;  %v1181_v24 = vpop.f32.mrb[106].mxu0 }
 0x1db   :  { %1284 = vst.msk [vmem:[%s2828_s2 + $0x308] sm:$0xff] %vm1187_vm1, %v1160_v17  ;;  %v1164_v22 = vadd.f32 %v1163_v1, %v860_v20  ;;  %v1183_v25 = vpop.f32.mrb[107].mxu0 }
 0x1dc   :  { %1285 = vst [vmem:[%s2828_s2 + $0x310] sm:$0xff] %v1162_v19 }
 0x1dd   :  { %1286 = vst.msk [vmem:[%s2828_s2 + $0x318] sm:$0xff] %vm1187_vm1, %v1164_v22 }
 0x1df   :  { %v864_v26 = vpop.f32.mrb[100].mxu1 }
 0x1e0   :  { %v1168_v27 = vadd.f32 %v1167_v9, %v864_v26  ;;  %v866_v28 = vpop.f32.mrb[101].mxu1 }
 0x1e1   :  { %v1170_v29 = vadd.f32 %v1169_v11, %v866_v28  ;;  %v868_v30 = vpop.f32.mrb[102].mxu1 }
 0x1e2   :  { %1287 = vst [vmem:[%s2828_s2 + $0x320] sm:$0xff] %v1168_v27  ;;  %v1172_v31 = vadd.f32 %v1171_v12, %v868_v30  ;;  %v870_v32 = vpop.f32.mrb[103].mxu1 }
 0x1e3   :  { %1288 = vst.msk [vmem:[%s2828_s2 + $0x328] sm:$0xff] %vm1187_vm1, %v1170_v29  ;;  %v1174_v33 = vadd.f32 %v1173_v13, %v870_v32 }
 0x1e4   :  { %1289 = vst [vmem:[%s2828_s2 + $0x330] sm:$0xff] %v1172_v31 }
 0x1e5   :  { %1290 = vst.msk [vmem:[%s2828_s2 + $0x338] sm:$0xff] %vm1187_vm1, %v1174_v33 }
 0x1e7   :  { %v874_v34 = vpop.f32.mrb[104].mxu1 }
 0x1e8   :  { %v1178_v35 = vadd.f32 %v1177_v21, %v874_v34  ;;  %v876_v36 = vpop.f32.mrb[105].mxu1 }
 0x1e9   :  { %v1180_v37 = vadd.f32 %v1179_v23, %v876_v36  ;;  %v878_v38 = vpop.f32.mrb[106].mxu1 }
 0x1ea   :  { %1291 = vst [vmem:[%s2828_s2 + $0x340] sm:$0xff] %v1178_v35  ;;  %v1182_v39 = vadd.f32 %v1181_v24, %v878_v38  ;;  %v880_v40 = vpop.f32.mrb[107].mxu1 }
 0x1eb   :  { %1292 = vst.msk [vmem:[%s2828_s2 + $0x348] sm:$0xff] %vm1187_vm1, %v1180_v37  ;;  %v1184_v41 = vadd.f32 %v1183_v25, %v880_v40 }
 0x1ec   :  { %1293 = vst [vmem:[%s2828_s2 + $0x350] sm:$0xff] %v1182_v39 }
 0x1ed   :  { %1294 = vst.msk [vmem:[%s2828_s2 + $0x358] sm:$0xff] %vm1187_vm1, %v1184_v41 }

</bundles_post_ra>
